<compile_context>
chip_gen: v7x
topology: tpu7x:2x2x1
jax: 0.10.0
libtpu: 0.0.40
codegen_flags: <defaults>
</compile_context>

<pallas_src>
import functools
import math

import jax
import jax.numpy as jnp
from jax import lax
from jax.experimental import pallas as pl
from jax.experimental.pallas import tpu as pltpu


_VMEM = pl.BlockSpec(memory_space=pltpu.MemorySpace.VMEM)


# ------------------------------ Fused kernel ---------------------------------

def fused_rnn_kernel(*refs, seq, n_layers):
    # refs = [ids, table, (wih, whh, b) * n_layers, h0, c0, wlin, blin,   <- inputs
    #         out, hT, cT,                                                <- outputs
    #         ys_scratch]                                                 <- scratch
    n_in = 2 + 3 * n_layers + 4
    ids_ref, table_ref = refs[0], refs[1]
    layer_refs = refs[2:2 + 3 * n_layers]
    h0_ref, c0_ref, wlin_ref, blin_ref = refs[2 + 3 * n_layers:n_in]
    out_ref, hT_ref, cT_ref = refs[n_in:n_in + 3]
    ys_ref = refs[n_in + 3]                                   # (T*Bp, H) bf16 scratch

    T = seq
    Bp, H = h0_ref.shape[1], h0_ref.shape[2]
    V = table_ref.shape[0]
    N = T * Bp

    # ---- Embedding: one-hot @ table, all bf16 (V is tiny here). ----
    # TODO(synk): for realistic vocab sizes replace with a scalar-prefetched DMA row
    # gather (ids in SMEM, table in HBM) instead of the O(N*V) one-hot matmul.
    ids = ids_ref[...]                                                    # (N, 1) int32
    onehot = (ids == lax.broadcasted_iota(jnp.int32, (N, V), 1)).astype(jnp.bfloat16)
    x_bf = jnp.dot(onehot, table_ref[...],
                   preferred_element_type=jnp.float32).astype(jnp.bfloat16)  # (N, E)

    h = None
    for l in range(n_layers):
        wih_ref, whh_ref, b_ref = layer_refs[3 * l: 3 * l + 3]
        is_last = (l == n_layers - 1)

        # Hoisted input projection for ALL timesteps: one big lane-dense matmul.
        xproj = (jnp.dot(x_bf, wih_ref[...], preferred_element_type=jnp.float32)
                 + b_ref[...])                                            # (N, 4H) f32

        # Recurrent weight loaded once (lives in vregs/VMEM for the whole loop).
        whh = whh_ref[...]                                                # (H, 4H) bf16

        h = h0_ref[l]                                                     # (Bp, H) f32
        c = c0_ref[l]                                                     # (Bp, H) f32

        # Fully unrolled time loop (T is small & compile-time constant).
        # TODO(synk): for realistic T switch to lax.fori_loop(..., unroll=4-8).
        for t in range(T):
            gates = (xproj[t * Bp:(t + 1) * Bp, :]
                     + jnp.dot(h.astype(jnp.bfloat16), whh,
                               preferred_element_type=jnp.float32))       # (Bp, 4H) f32
            # sigmoid(x) = 0.5 * (1 + tanh(0.5 x)): single EUP tanh over all 4H lanes
            # instead of exp + divide on the serial per-step chain.
            t_half = jnp.tanh(0.5 * gates)
            i_g = 0.5 * (1.0 + t_half[:, 0 * H:1 * H])
            f_g = 0.5 * (1.0 + t_half[:, 1 * H:2 * H])
            o_g = 0.5 * (1.0 + t_half[:, 3 * H:4 * H])
            g_g = jnp.tanh(gates[:, 2 * H:3 * H])
            c = f_g * c + i_g * g_g
            h = o_g * jnp.tanh(c)
            if not is_last:
                # Stream this step's hidden state into the preallocated scratch
                # (bounded live range; feeds the next layer's hoisted projection).
                ys_ref[pl.ds(t * Bp, Bp), :] = h.astype(jnp.bfloat16)

        hT_ref[l] = h
        cT_ref[l] = c
        if not is_last:
            x_bf = ys_ref[...]                                            # (N, H) bf16

    # ---- Linear head on the last timestep's hidden state (lane-dense 128-out). ----
    out_ref[...] = (jnp.dot(h.astype(jnp.bfloat16), wlin_ref[...],
                            preferred_element_type=jnp.float32)
                    + blin_ref[...])


# --------------------------- Parameter construction --------------------------

def init_params(key, vocab_size, output_size, embedding_dim, hidden_dim, n_layers):
    keys = jax.random.split(key, 4 * n_layers + 3)
    k = 1.0 / math.sqrt(hidden_dim)
    params = {
        # Table stored bf16: a one-hot matmul only selects rows, and downstream
        # matmul operands are bf16 anyway.
        "embedding": jax.random.normal(keys[0], (vocab_size, embedding_dim),
                                       jnp.float32).astype(jnp.bfloat16),
        "layers": [],
    }
    idx = 1
    for layer in range(n_layers):
        din = embedding_dim if layer == 0 else hidden_dim
        w_ih = jax.random.uniform(keys[idx + 0], (4 * hidden_dim, din), jnp.float32, -k, k)
        w_hh = jax.random.uniform(keys[idx + 1], (4 * hidden_dim, hidden_dim), jnp.float32, -k, k)
        b_ih = jax.random.uniform(keys[idx + 2], (4 * hidden_dim,), jnp.float32, -k, k)
        b_hh = jax.random.uniform(keys[idx + 3], (4 * hidden_dim,), jnp.float32, -k, k)
        idx += 4
        # Fused gate packing (torch gate order i|f|g|o along rows of w_ih/w_hh):
        wih_f = w_ih.T.astype(jnp.bfloat16)                       # (Din, 4H)
        whh_f = w_hh.T.astype(jnp.bfloat16)                       # (H,   4H)
        b_f = (b_ih + b_hh).reshape(1, 4 * hidden_dim)            # (1,   4H) f32
        params["layers"].append((wih_f, whh_f, b_f))
    w_lin = jax.random.uniform(keys[idx + 0], (output_size, hidden_dim), jnp.float32, -k, k)
    b_lin = jax.random.uniform(keys[idx + 1], (output_size,), jnp.float32, -k, k)
    # Pad linear head to a 128-lane-dense output slab; slice back in the wrapper.
    o_pad = ((output_size + 127) // 128) * 128
    w_lin_t = jnp.zeros((hidden_dim, o_pad), jnp.float32).at[:, :output_size].set(w_lin.T)
    params["w_lin_t"] = w_lin_t.astype(jnp.bfloat16)              # (H, Op)
    params["b_lin"] = jnp.zeros((1, o_pad), jnp.float32).at[0, :output_size].set(b_lin)
    return params


def init_hidden(n_layers, batch_size, hidden_dim):
    z = jnp.zeros((n_layers, batch_size, hidden_dim), jnp.float32)
    return (z, z)


# ------------------------------- Forward pass ---------------------------------

def _nbytes(shape, dtype):
    return math.prod(shape) * jnp.dtype(dtype).itemsize


@functools.partial(jax.jit, static_argnames=("out_dim",))
def rnn_forward(params, tokens, hidden, *, out_dim):
    """Mirrors RNN.forward: returns (output[:, -1], (h_n, c_n))."""
    h0_all, c0_all = hidden                                   # each (L, B, H)
    bsz, seq = tokens.shape
    n_layers, _, hidden_dim = h0_all.shape
    o_pad = params["w_lin_t"].shape[1]

    # Pad batch to a multiple of 8 sublanes (padded rows are independent & discarded).
    # TODO(synk): on v7x with a non-trivial batch, add a "parallel" batch grid axis so
    # the recurrence shards across both TensorCores.
    bp = ((bsz + 7) // 8) * 8
    tok_p = jnp.zeros((bp, seq), jnp.int32).at[:bsz].set(tokens.astype(jnp.int32))
    ids = jnp.transpose(tok_p).reshape(seq * bp, 1)           # time-major flat (N, 1)
    h0_p = jnp.zeros((n_layers, bp, hidden_dim), jnp.float32).at[:, :bsz].set(h0_all)
    c0_p = jnp.zeros((n_layers, bp, hidden_dim), jnp.float32).at[:, :bsz].set(c0_all)

    flat_w = []
    for (wih_f, whh_f, b_f) in params["layers"]:
        flat_w += [wih_f, whh_f, b_f]
    n_in = 2 + 3 * n_layers + 4

    inputs = (ids, params["embedding"], *flat_w, h0_p, c0_p,
              params["w_lin_t"], params["b_lin"])
    out_shapes = (
        jax.ShapeDtypeStruct((bp, o_pad), jnp.float32),
        jax.ShapeDtypeStruct((n_layers, bp, hidden_dim), jnp.float32),
        jax.ShapeDtypeStruct((n_layers, bp, hidden_dim), jnp.float32),
    )
    scratch_shapes = [pltpu.VMEM((seq * bp, hidden_dim), jnp.bfloat16)]   # ys buffer

    # VMEM limit sized from the actual residents (inputs + outputs + scratch + the
    # per-layer (N,4H) f32 xproj slab), with headroom, instead of chip defaults.
    resident = sum(_nbytes(x.shape, x.dtype) for x in inputs)
    resident += sum(_nbytes(s.shape, s.dtype) for s in out_shapes)
    resident += _nbytes((seq * bp, hidden_dim), jnp.bfloat16)             # ys scratch
    resident += _nbytes((seq * bp, 4 * hidden_dim), jnp.float32)          # xproj slab
    vmem_limit = int(min(96 << 20, max(16 << 20, 4 * resident)))

    out_p, h_t_p, c_t_p = pl.pallas_call(
        functools.partial(fused_rnn_kernel, seq=seq, n_layers=n_layers),
        out_shape=out_shapes,
        in_specs=[_VMEM] * n_in,
        out_specs=(_VMEM, _VMEM, _VMEM),
        scratch_shapes=scratch_shapes,
        compiler_params=pltpu.CompilerParams(vmem_limit_bytes=vmem_limit),
    )(*inputs)

    out = out_p[:bsz, :out_dim]
    h_n = h_t_p[:, :bsz, :]
    c_n = c_t_p[:, :bsz, :]
    return out, (h_n, c_n)


# ----------------------------------- Main -------------------------------------

if __name__ == "__main__":
    vocab_size = 50
    output_size = 10
    embedding_dim = 32
    hidden_dim = 32
    n_layers = 2
    batch = 2
    seq = 8

    key = jax.random.PRNGKey(0)
    pkey, tkey = jax.random.split(key)
    params = init_params(pkey, vocab_size, output_size, embedding_dim, hidden_dim, n_layers)
    tokens = jax.random.randint(tkey, (batch, seq), 0, vocab_size, dtype=jnp.int32)
    hidden = init_hidden(n_layers, batch, hidden_dim)

    out, (h_n, c_n) = rnn_forward(params, tokens, hidden, out_dim=output_size)
    jax.block_until_ready((out, h_n, c_n))

    assert out.shape == (batch, output_size)
    assert h_n.shape == (n_layers, batch, hidden_dim)
    assert c_n.shape == (n_layers, batch, hidden_dim)
    print("KERNEL_OK")
</pallas_src>

<mosaic_0001>
module attributes {stable_mosaic.version = 11 : i64} {
  func.func @fused_rnn_kernel(%arg0: memref<64x1xi32, #tpu.memory_space<vmem>>, %arg1: memref<50x32xbf16, #tpu.memory_space<vmem>>, %arg2: memref<32x128xbf16, #tpu.memory_space<vmem>>, %arg3: memref<32x128xbf16, #tpu.memory_space<vmem>>, %arg4: memref<1x128xf32, #tpu.memory_space<vmem>>, %arg5: memref<32x128xbf16, #tpu.memory_space<vmem>>, %arg6: memref<32x128xbf16, #tpu.memory_space<vmem>>, %arg7: memref<1x128xf32, #tpu.memory_space<vmem>>, %arg8: memref<2x8x32xf32, #tpu.memory_space<vmem>>, %arg9: memref<2x8x32xf32, #tpu.memory_space<vmem>>, %arg10: memref<32x128xbf16, #tpu.memory_space<vmem>>, %arg11: memref<1x128xf32, #tpu.memory_space<vmem>>, %arg12: memref<8x128xf32, #tpu.memory_space<vmem>>, %arg13: memref<2x8x32xf32, #tpu.memory_space<vmem>>, %arg14: memref<2x8x32xf32, #tpu.memory_space<vmem>>, %arg15: memref<64x32xbf16, #tpu.memory_space<vmem>>) attributes {dimension_semantics = [], scalar_prefetch = 0 : i64, scratch_operands = 1 : i64, tpu.core_type = #tpu.core_type<tc>} {
    %c0 = arith.constant 0 : index
    %c0_0 = arith.constant 0 : index
    %0 = vector.load %arg0[%c0, %c0_0] : memref<64x1xi32, #tpu.memory_space<vmem>>, vector<64x1xi32>
    %1 = tpu.iota {dimensions = array<i32: 1>} : vector<64x50xi32>
    %2 = vector.broadcast %0 : vector<64x1xi32> to vector<64x50xi32>
    %3 = arith.cmpi eq, %2, %1 : vector<64x50xi32>
    %4 = arith.extui %3 : vector<64x50xi1> to vector<64x50xi32>
    %5 = arith.sitofp %4 : vector<64x50xi32> to vector<64x50xf32>
    %6 = arith.truncf %5 : vector<64x50xf32> to vector<64x50xbf16>
    %c0_1 = arith.constant 0 : index
    %c0_2 = arith.constant 0 : index
    %7 = vector.load %arg1[%c0_1, %c0_2] : memref<50x32xbf16, #tpu.memory_space<vmem>>, vector<50x32xbf16>
    %cst = arith.constant dense<0.000000e+00> : vector<64x32xf32>
    %8 = tpu.matmul %6, %7, %cst {dimension_numbers = #tpu.dot_dimension_numbers<[1], [0], [0], [1], [0, 0, 1, 1], [], []>} : vector<64x50xbf16>, vector<50x32xbf16>, vector<64x32xf32> -> vector<64x32xf32>
    %9 = arith.truncf %8 : vector<64x32xf32> to vector<64x32xbf16>
    %c0_3 = arith.constant 0 : index
    %c0_4 = arith.constant 0 : index
    %10 = vector.load %arg2[%c0_3, %c0_4] : memref<32x128xbf16, #tpu.memory_space<vmem>>, vector<32x128xbf16>
    %cst_5 = arith.constant dense<0.000000e+00> : vector<64x128xf32>
    %11 = tpu.matmul %9, %10, %cst_5 {dimension_numbers = #tpu.dot_dimension_numbers<[1], [0], [0], [1], [0, 0, 1, 1], [], []>} : vector<64x32xbf16>, vector<32x128xbf16>, vector<64x128xf32> -> vector<64x128xf32>
    %c0_6 = arith.constant 0 : index
    %c0_7 = arith.constant 0 : index
    %12 = vector.load %arg4[%c0_6, %c0_7] : memref<1x128xf32, #tpu.memory_space<vmem>>, vector<1x128xf32>
    %13 = vector.broadcast %12 : vector<1x128xf32> to vector<64x128xf32>
    %14 = arith.addf %11, %13 : vector<64x128xf32>
    %c0_8 = arith.constant 0 : index
    %c0_9 = arith.constant 0 : index
    %15 = vector.load %arg3[%c0_8, %c0_9] : memref<32x128xbf16, #tpu.memory_space<vmem>>, vector<32x128xbf16>
    %c0_10 = arith.constant 0 : index
    %c0_11 = arith.constant 0 : index
    %c0_12 = arith.constant 0 : index
    %16 = vector.load %arg8[%c0_10, %c0_11, %c0_12] : memref<2x8x32xf32, #tpu.memory_space<vmem>>, vector<1x8x32xf32>
    %17 = vector.shape_cast %16 : vector<1x8x32xf32> to vector<8x32xf32>
    %c0_13 = arith.constant 0 : index
    %c0_14 = arith.constant 0 : index
    %c0_15 = arith.constant 0 : index
    %18 = vector.load %arg9[%c0_13, %c0_14, %c0_15] : memref<2x8x32xf32, #tpu.memory_space<vmem>>, vector<1x8x32xf32>
    %19 = vector.shape_cast %18 : vector<1x8x32xf32> to vector<8x32xf32>
    %20 = vector.extract_strided_slice %14 {offsets = [0, 0], sizes = [8, 128], strides = [1, 1]} : vector<64x128xf32> to vector<8x128xf32>
    %21 = arith.truncf %17 : vector<8x32xf32> to vector<8x32xbf16>
    %cst_16 = arith.constant dense<0.000000e+00> : vector<8x128xf32>
    %22 = tpu.matmul %21, %15, %cst_16 {dimension_numbers = #tpu.dot_dimension_numbers<[1], [0], [0], [1], [0, 0, 1, 1], [], []>} : vector<8x32xbf16>, vector<32x128xbf16>, vector<8x128xf32> -> vector<8x128xf32>
    %23 = arith.addf %20, %22 : vector<8x128xf32>
    %cst_17 = arith.constant 5.000000e-01 : f32
    %24 = vector.broadcast %cst_17 : f32 to vector<8x128xf32>
    %25 = arith.mulf %24, %23 : vector<8x128xf32>
    %26 = math.tanh %25 : vector<8x128xf32>
    %27 = vector.extract_strided_slice %26 {offsets = [0, 0], sizes = [8, 32], strides = [1, 1]} : vector<8x128xf32> to vector<8x32xf32>
    %cst_18 = arith.constant 1.000000e+00 : f32
    %28 = vector.broadcast %cst_18 : f32 to vector<8x32xf32>
    %29 = arith.addf %28, %27 : vector<8x32xf32>
    %cst_19 = arith.constant 5.000000e-01 : f32
    %30 = vector.broadcast %cst_19 : f32 to vector<8x32xf32>
    %31 = arith.mulf %30, %29 : vector<8x32xf32>
    %32 = vector.extract_strided_slice %26 {offsets = [0, 32], sizes = [8, 32], strides = [1, 1]} : vector<8x128xf32> to vector<8x32xf32>
    %cst_20 = arith.constant 1.000000e+00 : f32
    %33 = vector.broadcast %cst_20 : f32 to vector<8x32xf32>
    %34 = arith.addf %33, %32 : vector<8x32xf32>
    %cst_21 = arith.constant 5.000000e-01 : f32
    %35 = vector.broadcast %cst_21 : f32 to vector<8x32xf32>
    %36 = arith.mulf %35, %34 : vector<8x32xf32>
    %37 = vector.extract_strided_slice %26 {offsets = [0, 96], sizes = [8, 32], strides = [1, 1]} : vector<8x128xf32> to vector<8x32xf32>
    %cst_22 = arith.constant 1.000000e+00 : f32
    %38 = vector.broadcast %cst_22 : f32 to vector<8x32xf32>
    %39 = arith.addf %38, %37 : vector<8x32xf32>
    %cst_23 = arith.constant 5.000000e-01 : f32
    %40 = vector.broadcast %cst_23 : f32 to vector<8x32xf32>
    %41 = arith.mulf %40, %39 : vector<8x32xf32>
    %42 = vector.extract_strided_slice %23 {offsets = [0, 64], sizes = [8, 32], strides = [1, 1]} : vector<8x128xf32> to vector<8x32xf32>
    %43 = math.tanh %42 : vector<8x32xf32>
    %44 = arith.mulf %36, %19 : vector<8x32xf32>
    %45 = arith.mulf %31, %43 : vector<8x32xf32>
    %46 = arith.addf %44, %45 : vector<8x32xf32>
    %47 = math.tanh %46 : vector<8x32xf32>
    %48 = arith.mulf %41, %47 : vector<8x32xf32>
    %49 = arith.truncf %48 : vector<8x32xf32> to vector<8x32xbf16>
    %c0_24 = arith.constant 0 : index
    %c0_25 = arith.constant 0 : index
    %50 = vector.load %arg15[%c0_24, %c0_25] : memref<64x32xbf16, #tpu.memory_space<vmem>>, vector<8x32xbf16>
    tpu.vector_store %arg15[%c0_24, %c0_25], %49 {strides = array<i32>} : memref<64x32xbf16, #tpu.memory_space<vmem>>, vector<8x32xbf16>,
    %51 = vector.extract_strided_slice %14 {offsets = [8, 0], sizes = [8, 128], strides = [1, 1]} : vector<64x128xf32> to vector<8x128xf32>
    %52 = arith.truncf %48 : vector<8x32xf32> to vector<8x32xbf16>
    %cst_26 = arith.constant dense<0.000000e+00> : vector<8x128xf32>
    %53 = tpu.matmul %52, %15, %cst_26 {dimension_numbers = #tpu.dot_dimension_numbers<[1], [0], [0], [1], [0, 0, 1, 1], [], []>} : vector<8x32xbf16>, vector<32x128xbf16>, vector<8x128xf32> -> vector<8x128xf32>
    %54 = arith.addf %51, %53 : vector<8x128xf32>
    %cst_27 = arith.constant 5.000000e-01 : f32
    %55 = vector.broadcast %cst_27 : f32 to vector<8x128xf32>
    %56 = arith.mulf %55, %54 : vector<8x128xf32>
    %57 = math.tanh %56 : vector<8x128xf32>
    %58 = vector.extract_strided_slice %57 {offsets = [0, 0], sizes = [8, 32], strides = [1, 1]} : vector<8x128xf32> to vector<8x32xf32>
    %cst_28 = arith.constant 1.000000e+00 : f32
    %59 = vector.broadcast %cst_28 : f32 to vector<8x32xf32>
    %60 = arith.addf %59, %58 : vector<8x32xf32>
    %cst_29 = arith.constant 5.000000e-01 : f32
    %61 = vector.broadcast %cst_29 : f32 to vector<8x32xf32>
    %62 = arith.mulf %61, %60 : vector<8x32xf32>
    %63 = vector.extract_strided_slice %57 {offsets = [0, 32], sizes = [8, 32], strides = [1, 1]} : vector<8x128xf32> to vector<8x32xf32>
    %cst_30 = arith.constant 1.000000e+00 : f32
    %64 = vector.broadcast %cst_30 : f32 to vector<8x32xf32>
    %65 = arith.addf %64, %63 : vector<8x32xf32>
    %cst_31 = arith.constant 5.000000e-01 : f32
    %66 = vector.broadcast %cst_31 : f32 to vector<8x32xf32>
    %67 = arith.mulf %66, %65 : vector<8x32xf32>
    %68 = vector.extract_strided_slice %57 {offsets = [0, 96], sizes = [8, 32], strides = [1, 1]} : vector<8x128xf32> to vector<8x32xf32>
    %cst_32 = arith.constant 1.000000e+00 : f32
    %69 = vector.broadcast %cst_32 : f32 to vector<8x32xf32>
    %70 = arith.addf %69, %68 : vector<8x32xf32>
    %cst_33 = arith.constant 5.000000e-01 : f32
    %71 = vector.broadcast %cst_33 : f32 to vector<8x32xf32>
    %72 = arith.mulf %71, %70 : vector<8x32xf32>
    %73 = vector.extract_strided_slice %54 {offsets = [0, 64], sizes = [8, 32], strides = [1, 1]} : vector<8x128xf32> to vector<8x32xf32>
    %74 = math.tanh %73 : vector<8x32xf32>
    %75 = arith.mulf %67, %46 : vector<8x32xf32>
    %76 = arith.mulf %62, %74 : vector<8x32xf32>
    %77 = arith.addf %75, %76 : vector<8x32xf32>
    %78 = math.tanh %77 : vector<8x32xf32>
    %79 = arith.mulf %72, %78 : vector<8x32xf32>
    %80 = arith.truncf %79 : vector<8x32xf32> to vector<8x32xbf16>
    %c8 = arith.constant 8 : index
    %c0_34 = arith.constant 0 : index
    %81 = vector.load %arg15[%c8, %c0_34] : memref<64x32xbf16, #tpu.memory_space<vmem>>, vector<8x32xbf16>
    tpu.vector_store %arg15[%c8, %c0_34], %80 {strides = array<i32>} : memref<64x32xbf16, #tpu.memory_space<vmem>>, vector<8x32xbf16>,
    %82 = vector.extract_strided_slice %14 {offsets = [16, 0], sizes = [8, 128], strides = [1, 1]} : vector<64x128xf32> to vector<8x128xf32>
    %83 = arith.truncf %79 : vector<8x32xf32> to vector<8x32xbf16>
    %cst_35 = arith.constant dense<0.000000e+00> : vector<8x128xf32>
    %84 = tpu.matmul %83, %15, %cst_35 {dimension_numbers = #tpu.dot_dimension_numbers<[1], [0], [0], [1], [0, 0, 1, 1], [], []>} : vector<8x32xbf16>, vector<32x128xbf16>, vector<8x128xf32> -> vector<8x128xf32>
    %85 = arith.addf %82, %84 : vector<8x128xf32>
    %cst_36 = arith.constant 5.000000e-01 : f32
    %86 = vector.broadcast %cst_36 : f32 to vector<8x128xf32>
    %87 = arith.mulf %86, %85 : vector<8x128xf32>
    %88 = math.tanh %87 : vector<8x128xf32>
    %89 = vector.extract_strided_slice %88 {offsets = [0, 0], sizes = [8, 32], strides = [1, 1]} : vector<8x128xf32> to vector<8x32xf32>
    %cst_37 = arith.constant 1.000000e+00 : f32
    %90 = vector.broadcast %cst_37 : f32 to vector<8x32xf32>
    %91 = arith.addf %90, %89 : vector<8x32xf32>
    %cst_38 = arith.constant 5.000000e-01 : f32
    %92 = vector.broadcast %cst_38 : f32 to vector<8x32xf32>
    %93 = arith.mulf %92, %91 : vector<8x32xf32>
    %94 = vector.extract_strided_slice %88 {offsets = [0, 32], sizes = [8, 32], strides = [1, 1]} : vector<8x128xf32> to vector<8x32xf32>
    %cst_39 = arith.constant 1.000000e+00 : f32
    %95 = vector.broadcast %cst_39 : f32 to vector<8x32xf32>
    %96 = arith.addf %95, %94 : vector<8x32xf32>
    %cst_40 = arith.constant 5.000000e-01 : f32
    %97 = vector.broadcast %cst_40 : f32 to vector<8x32xf32>
    %98 = arith.mulf %97, %96 : vector<8x32xf32>
    %99 = vector.extract_strided_slice %88 {offsets = [0, 96], sizes = [8, 32], strides = [1, 1]} : vector<8x128xf32> to vector<8x32xf32>
    %cst_41 = arith.constant 1.000000e+00 : f32
    %100 = vector.broadcast %cst_41 : f32 to vector<8x32xf32>
    %101 = arith.addf %100, %99 : vector<8x32xf32>
    %cst_42 = arith.constant 5.000000e-01 : f32
    %102 = vector.broadcast %cst_42 : f32 to vector<8x32xf32>
    %103 = arith.mulf %102, %101 : vector<8x32xf32>
    %104 = vector.extract_strided_slice %85 {offsets = [0, 64], sizes = [8, 32], strides = [1, 1]} : vector<8x128xf32> to vector<8x32xf32>
    %105 = math.tanh %104 : vector<8x32xf32>
    %106 = arith.mulf %98, %77 : vector<8x32xf32>
    %107 = arith.mulf %93, %105 : vector<8x32xf32>
    %108 = arith.addf %106, %107 : vector<8x32xf32>
    %109 = math.tanh %108 : vector<8x32xf32>
    %110 = arith.mulf %103, %109 : vector<8x32xf32>
    %111 = arith.truncf %110 : vector<8x32xf32> to vector<8x32xbf16>
    %c16 = arith.constant 16 : index
    %c0_43 = arith.constant 0 : index
    %112 = vector.load %arg15[%c16, %c0_43] : memref<64x32xbf16, #tpu.memory_space<vmem>>, vector<8x32xbf16>
    tpu.vector_store %arg15[%c16, %c0_43], %111 {strides = array<i32>} : memref<64x32xbf16, #tpu.memory_space<vmem>>, vector<8x32xbf16>,
    %113 = vector.extract_strided_slice %14 {offsets = [24, 0], sizes = [8, 128], strides = [1, 1]} : vector<64x128xf32> to vector<8x128xf32>
    %114 = arith.truncf %110 : vector<8x32xf32> to vector<8x32xbf16>
    %cst_44 = arith.constant dense<0.000000e+00> : vector<8x128xf32>
    %115 = tpu.matmul %114, %15, %cst_44 {dimension_numbers = #tpu.dot_dimension_numbers<[1], [0], [0], [1], [0, 0, 1, 1], [], []>} : vector<8x32xbf16>, vector<32x128xbf16>, vector<8x128xf32> -> vector<8x128xf32>
    %116 = arith.addf %113, %115 : vector<8x128xf32>
    %cst_45 = arith.constant 5.000000e-01 : f32
    %117 = vector.broadcast %cst_45 : f32 to vector<8x128xf32>
    %118 = arith.mulf %117, %116 : vector<8x128xf32>
    %119 = math.tanh %118 : vector<8x128xf32>
    %120 = vector.extract_strided_slice %119 {offsets = [0, 0], sizes = [8, 32], strides = [1, 1]} : vector<8x128xf32> to vector<8x32xf32>
    %cst_46 = arith.constant 1.000000e+00 : f32
    %121 = vector.broadcast %cst_46 : f32 to vector<8x32xf32>
    %122 = arith.addf %121, %120 : vector<8x32xf32>
    %cst_47 = arith.constant 5.000000e-01 : f32
    %123 = vector.broadcast %cst_47 : f32 to vector<8x32xf32>
    %124 = arith.mulf %123, %122 : vector<8x32xf32>
    %125 = vector.extract_strided_slice %119 {offsets = [0, 32], sizes = [8, 32], strides = [1, 1]} : vector<8x128xf32> to vector<8x32xf32>
    %cst_48 = arith.constant 1.000000e+00 : f32
    %126 = vector.broadcast %cst_48 : f32 to vector<8x32xf32>
    %127 = arith.addf %126, %125 : vector<8x32xf32>
    %cst_49 = arith.constant 5.000000e-01 : f32
    %128 = vector.broadcast %cst_49 : f32 to vector<8x32xf32>
    %129 = arith.mulf %128, %127 : vector<8x32xf32>
    %130 = vector.extract_strided_slice %119 {offsets = [0, 96], sizes = [8, 32], strides = [1, 1]} : vector<8x128xf32> to vector<8x32xf32>
    %cst_50 = arith.constant 1.000000e+00 : f32
    %131 = vector.broadcast %cst_50 : f32 to vector<8x32xf32>
    %132 = arith.addf %131, %130 : vector<8x32xf32>
    %cst_51 = arith.constant 5.000000e-01 : f32
    %133 = vector.broadcast %cst_51 : f32 to vector<8x32xf32>
    %134 = arith.mulf %133, %132 : vector<8x32xf32>
    %135 = vector.extract_strided_slice %116 {offsets = [0, 64], sizes = [8, 32], strides = [1, 1]} : vector<8x128xf32> to vector<8x32xf32>
    %136 = math.tanh %135 : vector<8x32xf32>
    %137 = arith.mulf %129, %108 : vector<8x32xf32>
    %138 = arith.mulf %124, %136 : vector<8x32xf32>
    %139 = arith.addf %137, %138 : vector<8x32xf32>
    %140 = math.tanh %139 : vector<8x32xf32>
    %141 = arith.mulf %134, %140 : vector<8x32xf32>
    %142 = arith.truncf %141 : vector<8x32xf32> to vector<8x32xbf16>
    %c24 = arith.constant 24 : index
    %c0_52 = arith.constant 0 : index
    %143 = vector.load %arg15[%c24, %c0_52] : memref<64x32xbf16, #tpu.memory_space<vmem>>, vector<8x32xbf16>
    tpu.vector_store %arg15[%c24, %c0_52], %142 {strides = array<i32>} : memref<64x32xbf16, #tpu.memory_space<vmem>>, vector<8x32xbf16>,
    %144 = vector.extract_strided_slice %14 {offsets = [32, 0], sizes = [8, 128], strides = [1, 1]} : vector<64x128xf32> to vector<8x128xf32>
    %145 = arith.truncf %141 : vector<8x32xf32> to vector<8x32xbf16>
    %cst_53 = arith.constant dense<0.000000e+00> : vector<8x128xf32>
    %146 = tpu.matmul %145, %15, %cst_53 {dimension_numbers = #tpu.dot_dimension_numbers<[1], [0], [0], [1], [0, 0, 1, 1], [], []>} : vector<8x32xbf16>, vector<32x128xbf16>, vector<8x128xf32> -> vector<8x128xf32>
    %147 = arith.addf %144, %146 : vector<8x128xf32>
    %cst_54 = arith.constant 5.000000e-01 : f32
    %148 = vector.broadcast %cst_54 : f32 to vector<8x128xf32>
    %149 = arith.mulf %148, %147 : vector<8x128xf32>
    %150 = math.tanh %149 : vector<8x128xf32>
    %151 = vector.extract_strided_slice %150 {offsets = [0, 0], sizes = [8, 32], strides = [1, 1]} : vector<8x128xf32> to vector<8x32xf32>
    %cst_55 = arith.constant 1.000000e+00 : f32
    %152 = vector.broadcast %cst_55 : f32 to vector<8x32xf32>
    %153 = arith.addf %152, %151 : vector<8x32xf32>
    %cst_56 = arith.constant 5.000000e-01 : f32
    %154 = vector.broadcast %cst_56 : f32 to vector<8x32xf32>
    %155 = arith.mulf %154, %153 : vector<8x32xf32>
    %156 = vector.extract_strided_slice %150 {offsets = [0, 32], sizes = [8, 32], strides = [1, 1]} : vector<8x128xf32> to vector<8x32xf32>
    %cst_57 = arith.constant 1.000000e+00 : f32
    %157 = vector.broadcast %cst_57 : f32 to vector<8x32xf32>
    %158 = arith.addf %157, %156 : vector<8x32xf32>
    %cst_58 = arith.constant 5.000000e-01 : f32
    %159 = vector.broadcast %cst_58 : f32 to vector<8x32xf32>
    %160 = arith.mulf %159, %158 : vector<8x32xf32>
    %161 = vector.extract_strided_slice %150 {offsets = [0, 96], sizes = [8, 32], strides = [1, 1]} : vector<8x128xf32> to vector<8x32xf32>
    %cst_59 = arith.constant 1.000000e+00 : f32
    %162 = vector.broadcast %cst_59 : f32 to vector<8x32xf32>
    %163 = arith.addf %162, %161 : vector<8x32xf32>
    %cst_60 = arith.constant 5.000000e-01 : f32
    %164 = vector.broadcast %cst_60 : f32 to vector<8x32xf32>
    %165 = arith.mulf %164, %163 : vector<8x32xf32>
    %166 = vector.extract_strided_slice %147 {offsets = [0, 64], sizes = [8, 32], strides = [1, 1]} : vector<8x128xf32> to vector<8x32xf32>
    %167 = math.tanh %166 : vector<8x32xf32>
    %168 = arith.mulf %160, %139 : vector<8x32xf32>
    %169 = arith.mulf %155, %167 : vector<8x32xf32>
    %170 = arith.addf %168, %169 : vector<8x32xf32>
    %171 = math.tanh %170 : vector<8x32xf32>
    %172 = arith.mulf %165, %171 : vector<8x32xf32>
    %173 = arith.truncf %172 : vector<8x32xf32> to vector<8x32xbf16>
    %c32 = arith.constant 32 : index
    %c0_61 = arith.constant 0 : index
    %174 = vector.load %arg15[%c32, %c0_61] : memref<64x32xbf16, #tpu.memory_space<vmem>>, vector<8x32xbf16>
    tpu.vector_store %arg15[%c32, %c0_61], %173 {strides = array<i32>} : memref<64x32xbf16, #tpu.memory_space<vmem>>, vector<8x32xbf16>,
    %175 = vector.extract_strided_slice %14 {offsets = [40, 0], sizes = [8, 128], strides = [1, 1]} : vector<64x128xf32> to vector<8x128xf32>
    %176 = arith.truncf %172 : vector<8x32xf32> to vector<8x32xbf16>
    %cst_62 = arith.constant dense<0.000000e+00> : vector<8x128xf32>
    %177 = tpu.matmul %176, %15, %cst_62 {dimension_numbers = #tpu.dot_dimension_numbers<[1], [0], [0], [1], [0, 0, 1, 1], [], []>} : vector<8x32xbf16>, vector<32x128xbf16>, vector<8x128xf32> -> vector<8x128xf32>
    %178 = arith.addf %175, %177 : vector<8x128xf32>
    %cst_63 = arith.constant 5.000000e-01 : f32
    %179 = vector.broadcast %cst_63 : f32 to vector<8x128xf32>
    %180 = arith.mulf %179, %178 : vector<8x128xf32>
    %181 = math.tanh %180 : vector<8x128xf32>
    %182 = vector.extract_strided_slice %181 {offsets = [0, 0], sizes = [8, 32], strides = [1, 1]} : vector<8x128xf32> to vector<8x32xf32>
    %cst_64 = arith.constant 1.000000e+00 : f32
    %183 = vector.broadcast %cst_64 : f32 to vector<8x32xf32>
    %184 = arith.addf %183, %182 : vector<8x32xf32>
    %cst_65 = arith.constant 5.000000e-01 : f32
    %185 = vector.broadcast %cst_65 : f32 to vector<8x32xf32>
    %186 = arith.mulf %185, %184 : vector<8x32xf32>
    %187 = vector.extract_strided_slice %181 {offsets = [0, 32], sizes = [8, 32], strides = [1, 1]} : vector<8x128xf32> to vector<8x32xf32>
    %cst_66 = arith.constant 1.000000e+00 : f32
    %188 = vector.broadcast %cst_66 : f32 to vector<8x32xf32>
    %189 = arith.addf %188, %187 : vector<8x32xf32>
    %cst_67 = arith.constant 5.000000e-01 : f32
    %190 = vector.broadcast %cst_67 : f32 to vector<8x32xf32>
    %191 = arith.mulf %190, %189 : vector<8x32xf32>
    %192 = vector.extract_strided_slice %181 {offsets = [0, 96], sizes = [8, 32], strides = [1, 1]} : vector<8x128xf32> to vector<8x32xf32>
    %cst_68 = arith.constant 1.000000e+00 : f32
    %193 = vector.broadcast %cst_68 : f32 to vector<8x32xf32>
    %194 = arith.addf %193, %192 : vector<8x32xf32>
    %cst_69 = arith.constant 5.000000e-01 : f32
    %195 = vector.broadcast %cst_69 : f32 to vector<8x32xf32>
    %196 = arith.mulf %195, %194 : vector<8x32xf32>
    %197 = vector.extract_strided_slice %178 {offsets = [0, 64], sizes = [8, 32], strides = [1, 1]} : vector<8x128xf32> to vector<8x32xf32>
    %198 = math.tanh %197 : vector<8x32xf32>
    %199 = arith.mulf %191, %170 : vector<8x32xf32>
    %200 = arith.mulf %186, %198 : vector<8x32xf32>
    %201 = arith.addf %199, %200 : vector<8x32xf32>
    %202 = math.tanh %201 : vector<8x32xf32>
    %203 = arith.mulf %196, %202 : vector<8x32xf32>
    %204 = arith.truncf %203 : vector<8x32xf32> to vector<8x32xbf16>
    %c40 = arith.constant 40 : index
    %c0_70 = arith.constant 0 : index
    %205 = vector.load %arg15[%c40, %c0_70] : memref<64x32xbf16, #tpu.memory_space<vmem>>, vector<8x32xbf16>
    tpu.vector_store %arg15[%c40, %c0_70], %204 {strides = array<i32>} : memref<64x32xbf16, #tpu.memory_space<vmem>>, vector<8x32xbf16>,
    %206 = vector.extract_strided_slice %14 {offsets = [48, 0], sizes = [8, 128], strides = [1, 1]} : vector<64x128xf32> to vector<8x128xf32>
    %207 = arith.truncf %203 : vector<8x32xf32> to vector<8x32xbf16>
    %cst_71 = arith.constant dense<0.000000e+00> : vector<8x128xf32>
    %208 = tpu.matmul %207, %15, %cst_71 {dimension_numbers = #tpu.dot_dimension_numbers<[1], [0], [0], [1], [0, 0, 1, 1], [], []>} : vector<8x32xbf16>, vector<32x128xbf16>, vector<8x128xf32> -> vector<8x128xf32>
    %209 = arith.addf %206, %208 : vector<8x128xf32>
    %cst_72 = arith.constant 5.000000e-01 : f32
    %210 = vector.broadcast %cst_72 : f32 to vector<8x128xf32>
    %211 = arith.mulf %210, %209 : vector<8x128xf32>
    %212 = math.tanh %211 : vector<8x128xf32>
    %213 = vector.extract_strided_slice %212 {offsets = [0, 0], sizes = [8, 32], strides = [1, 1]} : vector<8x128xf32> to vector<8x32xf32>
    %cst_73 = arith.constant 1.000000e+00 : f32
    %214 = vector.broadcast %cst_73 : f32 to vector<8x32xf32>
    %215 = arith.addf %214, %213 : vector<8x32xf32>
    %cst_74 = arith.constant 5.000000e-01 : f32
    %216 = vector.broadcast %cst_74 : f32 to vector<8x32xf32>
    %217 = arith.mulf %216, %215 : vector<8x32xf32>
    %218 = vector.extract_strided_slice %212 {offsets = [0, 32], sizes = [8, 32], strides = [1, 1]} : vector<8x128xf32> to vector<8x32xf32>
    %cst_75 = arith.constant 1.000000e+00 : f32
    %219 = vector.broadcast %cst_75 : f32 to vector<8x32xf32>
    %220 = arith.addf %219, %218 : vector<8x32xf32>
    %cst_76 = arith.constant 5.000000e-01 : f32
    %221 = vector.broadcast %cst_76 : f32 to vector<8x32xf32>
    %222 = arith.mulf %221, %220 : vector<8x32xf32>
    %223 = vector.extract_strided_slice %212 {offsets = [0, 96], sizes = [8, 32], strides = [1, 1]} : vector<8x128xf32> to vector<8x32xf32>
    %cst_77 = arith.constant 1.000000e+00 : f32
    %224 = vector.broadcast %cst_77 : f32 to vector<8x32xf32>
    %225 = arith.addf %224, %223 : vector<8x32xf32>
    %cst_78 = arith.constant 5.000000e-01 : f32
    %226 = vector.broadcast %cst_78 : f32 to vector<8x32xf32>
    %227 = arith.mulf %226, %225 : vector<8x32xf32>
    %228 = vector.extract_strided_slice %209 {offsets = [0, 64], sizes = [8, 32], strides = [1, 1]} : vector<8x128xf32> to vector<8x32xf32>
    %229 = math.tanh %228 : vector<8x32xf32>
    %230 = arith.mulf %222, %201 : vector<8x32xf32>
    %231 = arith.mulf %217, %229 : vector<8x32xf32>
    %232 = arith.addf %230, %231 : vector<8x32xf32>
    %233 = math.tanh %232 : vector<8x32xf32>
    %234 = arith.mulf %227, %233 : vector<8x32xf32>
    %235 = arith.truncf %234 : vector<8x32xf32> to vector<8x32xbf16>
    %c48 = arith.constant 48 : index
    %c0_79 = arith.constant 0 : index
    %236 = vector.load %arg15[%c48, %c0_79] : memref<64x32xbf16, #tpu.memory_space<vmem>>, vector<8x32xbf16>
    tpu.vector_store %arg15[%c48, %c0_79], %235 {strides = array<i32>} : memref<64x32xbf16, #tpu.memory_space<vmem>>, vector<8x32xbf16>,
    %237 = vector.extract_strided_slice %14 {offsets = [56, 0], sizes = [8, 128], strides = [1, 1]} : vector<64x128xf32> to vector<8x128xf32>
    %238 = arith.truncf %234 : vector<8x32xf32> to vector<8x32xbf16>
    %cst_80 = arith.constant dense<0.000000e+00> : vector<8x128xf32>
    %239 = tpu.matmul %238, %15, %cst_80 {dimension_numbers = #tpu.dot_dimension_numbers<[1], [0], [0], [1], [0, 0, 1, 1], [], []>} : vector<8x32xbf16>, vector<32x128xbf16>, vector<8x128xf32> -> vector<8x128xf32>
    %240 = arith.addf %237, %239 : vector<8x128xf32>
    %cst_81 = arith.constant 5.000000e-01 : f32
    %241 = vector.broadcast %cst_81 : f32 to vector<8x128xf32>
    %242 = arith.mulf %241, %240 : vector<8x128xf32>
    %243 = math.tanh %242 : vector<8x128xf32>
    %244 = vector.extract_strided_slice %243 {offsets = [0, 0], sizes = [8, 32], strides = [1, 1]} : vector<8x128xf32> to vector<8x32xf32>
    %cst_82 = arith.constant 1.000000e+00 : f32
    %245 = vector.broadcast %cst_82 : f32 to vector<8x32xf32>
    %246 = arith.addf %245, %244 : vector<8x32xf32>
    %cst_83 = arith.constant 5.000000e-01 : f32
    %247 = vector.broadcast %cst_83 : f32 to vector<8x32xf32>
    %248 = arith.mulf %247, %246 : vector<8x32xf32>
    %249 = vector.extract_strided_slice %243 {offsets = [0, 32], sizes = [8, 32], strides = [1, 1]} : vector<8x128xf32> to vector<8x32xf32>
    %cst_84 = arith.constant 1.000000e+00 : f32
    %250 = vector.broadcast %cst_84 : f32 to vector<8x32xf32>
    %251 = arith.addf %250, %249 : vector<8x32xf32>
    %cst_85 = arith.constant 5.000000e-01 : f32
    %252 = vector.broadcast %cst_85 : f32 to vector<8x32xf32>
    %253 = arith.mulf %252, %251 : vector<8x32xf32>
    %254 = vector.extract_strided_slice %243 {offsets = [0, 96], sizes = [8, 32], strides = [1, 1]} : vector<8x128xf32> to vector<8x32xf32>
    %cst_86 = arith.constant 1.000000e+00 : f32
    %255 = vector.broadcast %cst_86 : f32 to vector<8x32xf32>
    %256 = arith.addf %255, %254 : vector<8x32xf32>
    %cst_87 = arith.constant 5.000000e-01 : f32
    %257 = vector.broadcast %cst_87 : f32 to vector<8x32xf32>
    %258 = arith.mulf %257, %256 : vector<8x32xf32>
    %259 = vector.extract_strided_slice %240 {offsets = [0, 64], sizes = [8, 32], strides = [1, 1]} : vector<8x128xf32> to vector<8x32xf32>
    %260 = math.tanh %259 : vector<8x32xf32>
    %261 = arith.mulf %253, %232 : vector<8x32xf32>
    %262 = arith.mulf %248, %260 : vector<8x32xf32>
    %263 = arith.addf %261, %262 : vector<8x32xf32>
    %264 = math.tanh %263 : vector<8x32xf32>
    %265 = arith.mulf %258, %264 : vector<8x32xf32>
    %266 = arith.truncf %265 : vector<8x32xf32> to vector<8x32xbf16>
    %c56 = arith.constant 56 : index
    %c0_88 = arith.constant 0 : index
    %267 = vector.load %arg15[%c56, %c0_88] : memref<64x32xbf16, #tpu.memory_space<vmem>>, vector<8x32xbf16>
    tpu.vector_store %arg15[%c56, %c0_88], %266 {strides = array<i32>} : memref<64x32xbf16, #tpu.memory_space<vmem>>, vector<8x32xbf16>,
    %c0_89 = arith.constant 0 : index
    %c0_90 = arith.constant 0 : index
    %c0_91 = arith.constant 0 : index
    %268 = vector.load %arg13[%c0_89, %c0_90, %c0_91] : memref<2x8x32xf32, #tpu.memory_space<vmem>>, vector<1x8x32xf32>
    %269 = vector.shape_cast %268 : vector<1x8x32xf32> to vector<8x32xf32>
    %270 = vector.shape_cast %265 : vector<8x32xf32> to vector<1x8x32xf32>
    tpu.vector_store %arg13[%c0_89, %c0_90, %c0_91], %270 {strides = array<i32>} : memref<2x8x32xf32, #tpu.memory_space<vmem>>, vector<1x8x32xf32>,
    %c0_92 = arith.constant 0 : index
    %c0_93 = arith.constant 0 : index
    %c0_94 = arith.constant 0 : index
    %271 = vector.load %arg14[%c0_92, %c0_93, %c0_94] : memref<2x8x32xf32, #tpu.memory_space<vmem>>, vector<1x8x32xf32>
    %272 = vector.shape_cast %271 : vector<1x8x32xf32> to vector<8x32xf32>
    %273 = vector.shape_cast %263 : vector<8x32xf32> to vector<1x8x32xf32>
    tpu.vector_store %arg14[%c0_92, %c0_93, %c0_94], %273 {strides = array<i32>} : memref<2x8x32xf32, #tpu.memory_space<vmem>>, vector<1x8x32xf32>,
    %c0_95 = arith.constant 0 : index
    %c0_96 = arith.constant 0 : index
    %274 = vector.load %arg15[%c0_95, %c0_96] : memref<64x32xbf16, #tpu.memory_space<vmem>>, vector<64x32xbf16>
    %c0_97 = arith.constant 0 : index
    %c0_98 = arith.constant 0 : index
    %275 = vector.load %arg5[%c0_97, %c0_98] : memref<32x128xbf16, #tpu.memory_space<vmem>>, vector<32x128xbf16>
    %cst_99 = arith.constant dense<0.000000e+00> : vector<64x128xf32>
    %276 = tpu.matmul %274, %275, %cst_99 {dimension_numbers = #tpu.dot_dimension_numbers<[1], [0], [0], [1], [0, 0, 1, 1], [], []>} : vector<64x32xbf16>, vector<32x128xbf16>, vector<64x128xf32> -> vector<64x128xf32>
    %c0_100 = arith.constant 0 : index
    %c0_101 = arith.constant 0 : index
    %277 = vector.load %arg7[%c0_100, %c0_101] : memref<1x128xf32, #tpu.memory_space<vmem>>, vector<1x128xf32>
    %278 = vector.broadcast %277 : vector<1x128xf32> to vector<64x128xf32>
    %279 = arith.addf %276, %278 : vector<64x128xf32>
    %c0_102 = arith.constant 0 : index
    %c0_103 = arith.constant 0 : index
    %280 = vector.load %arg6[%c0_102, %c0_103] : memref<32x128xbf16, #tpu.memory_space<vmem>>, vector<32x128xbf16>
    %c1 = arith.constant 1 : index
    %c0_104 = arith.constant 0 : index
    %c0_105 = arith.constant 0 : index
    %281 = vector.load %arg8[%c1, %c0_104, %c0_105] : memref<2x8x32xf32, #tpu.memory_space<vmem>>, vector<1x8x32xf32>
    %282 = vector.shape_cast %281 : vector<1x8x32xf32> to vector<8x32xf32>
    %c1_106 = arith.constant 1 : index
    %c0_107 = arith.constant 0 : index
    %c0_108 = arith.constant 0 : index
    %283 = vector.load %arg9[%c1_106, %c0_107, %c0_108] : memref<2x8x32xf32, #tpu.memory_space<vmem>>, vector<1x8x32xf32>
    %284 = vector.shape_cast %283 : vector<1x8x32xf32> to vector<8x32xf32>
    %285 = vector.extract_strided_slice %279 {offsets = [0, 0], sizes = [8, 128], strides = [1, 1]} : vector<64x128xf32> to vector<8x128xf32>
    %286 = arith.truncf %282 : vector<8x32xf32> to vector<8x32xbf16>
    %cst_109 = arith.constant dense<0.000000e+00> : vector<8x128xf32>
    %287 = tpu.matmul %286, %280, %cst_109 {dimension_numbers = #tpu.dot_dimension_numbers<[1], [0], [0], [1], [0, 0, 1, 1], [], []>} : vector<8x32xbf16>, vector<32x128xbf16>, vector<8x128xf32> -> vector<8x128xf32>
    %288 = arith.addf %285, %287 : vector<8x128xf32>
    %cst_110 = arith.constant 5.000000e-01 : f32
    %289 = vector.broadcast %cst_110 : f32 to vector<8x128xf32>
    %290 = arith.mulf %289, %288 : vector<8x128xf32>
    %291 = math.tanh %290 : vector<8x128xf32>
    %292 = vector.extract_strided_slice %291 {offsets = [0, 0], sizes = [8, 32], strides = [1, 1]} : vector<8x128xf32> to vector<8x32xf32>
    %cst_111 = arith.constant 1.000000e+00 : f32
    %293 = vector.broadcast %cst_111 : f32 to vector<8x32xf32>
    %294 = arith.addf %293, %292 : vector<8x32xf32>
    %cst_112 = arith.constant 5.000000e-01 : f32
    %295 = vector.broadcast %cst_112 : f32 to vector<8x32xf32>
    %296 = arith.mulf %295, %294 : vector<8x32xf32>
    %297 = vector.extract_strided_slice %291 {offsets = [0, 32], sizes = [8, 32], strides = [1, 1]} : vector<8x128xf32> to vector<8x32xf32>
    %cst_113 = arith.constant 1.000000e+00 : f32
    %298 = vector.broadcast %cst_113 : f32 to vector<8x32xf32>
    %299 = arith.addf %298, %297 : vector<8x32xf32>
    %cst_114 = arith.constant 5.000000e-01 : f32
    %300 = vector.broadcast %cst_114 : f32 to vector<8x32xf32>
    %301 = arith.mulf %300, %299 : vector<8x32xf32>
    %302 = vector.extract_strided_slice %291 {offsets = [0, 96], sizes = [8, 32], strides = [1, 1]} : vector<8x128xf32> to vector<8x32xf32>
    %cst_115 = arith.constant 1.000000e+00 : f32
    %303 = vector.broadcast %cst_115 : f32 to vector<8x32xf32>
    %304 = arith.addf %303, %302 : vector<8x32xf32>
    %cst_116 = arith.constant 5.000000e-01 : f32
    %305 = vector.broadcast %cst_116 : f32 to vector<8x32xf32>
    %306 = arith.mulf %305, %304 : vector<8x32xf32>
    %307 = vector.extract_strided_slice %288 {offsets = [0, 64], sizes = [8, 32], strides = [1, 1]} : vector<8x128xf32> to vector<8x32xf32>
    %308 = math.tanh %307 : vector<8x32xf32>
    %309 = arith.mulf %301, %284 : vector<8x32xf32>
    %310 = arith.mulf %296, %308 : vector<8x32xf32>
    %311 = arith.addf %309, %310 : vector<8x32xf32>
    %312 = math.tanh %311 : vector<8x32xf32>
    %313 = arith.mulf %306, %312 : vector<8x32xf32>
    %314 = vector.extract_strided_slice %279 {offsets = [8, 0], sizes = [8, 128], strides = [1, 1]} : vector<64x128xf32> to vector<8x128xf32>
    %315 = arith.truncf %313 : vector<8x32xf32> to vector<8x32xbf16>
    %cst_117 = arith.constant dense<0.000000e+00> : vector<8x128xf32>
    %316 = tpu.matmul %315, %280, %cst_117 {dimension_numbers = #tpu.dot_dimension_numbers<[1], [0], [0], [1], [0, 0, 1, 1], [], []>} : vector<8x32xbf16>, vector<32x128xbf16>, vector<8x128xf32> -> vector<8x128xf32>
    %317 = arith.addf %314, %316 : vector<8x128xf32>
    %cst_118 = arith.constant 5.000000e-01 : f32
    %318 = vector.broadcast %cst_118 : f32 to vector<8x128xf32>
    %319 = arith.mulf %318, %317 : vector<8x128xf32>
    %320 = math.tanh %319 : vector<8x128xf32>
    %321 = vector.extract_strided_slice %320 {offsets = [0, 0], sizes = [8, 32], strides = [1, 1]} : vector<8x128xf32> to vector<8x32xf32>
    %cst_119 = arith.constant 1.000000e+00 : f32
    %322 = vector.broadcast %cst_119 : f32 to vector<8x32xf32>
    %323 = arith.addf %322, %321 : vector<8x32xf32>
    %cst_120 = arith.constant 5.000000e-01 : f32
    %324 = vector.broadcast %cst_120 : f32 to vector<8x32xf32>
    %325 = arith.mulf %324, %323 : vector<8x32xf32>
    %326 = vector.extract_strided_slice %320 {offsets = [0, 32], sizes = [8, 32], strides = [1, 1]} : vector<8x128xf32> to vector<8x32xf32>
    %cst_121 = arith.constant 1.000000e+00 : f32
    %327 = vector.broadcast %cst_121 : f32 to vector<8x32xf32>
    %328 = arith.addf %327, %326 : vector<8x32xf32>
    %cst_122 = arith.constant 5.000000e-01 : f32
    %329 = vector.broadcast %cst_122 : f32 to vector<8x32xf32>
    %330 = arith.mulf %329, %328 : vector<8x32xf32>
    %331 = vector.extract_strided_slice %320 {offsets = [0, 96], sizes = [8, 32], strides = [1, 1]} : vector<8x128xf32> to vector<8x32xf32>
    %cst_123 = arith.constant 1.000000e+00 : f32
    %332 = vector.broadcast %cst_123 : f32 to vector<8x32xf32>
    %333 = arith.addf %332, %331 : vector<8x32xf32>
    %cst_124 = arith.constant 5.000000e-01 : f32
    %334 = vector.broadcast %cst_124 : f32 to vector<8x32xf32>
    %335 = arith.mulf %334, %333 : vector<8x32xf32>
    %336 = vector.extract_strided_slice %317 {offsets = [0, 64], sizes = [8, 32], strides = [1, 1]} : vector<8x128xf32> to vector<8x32xf32>
    %337 = math.tanh %336 : vector<8x32xf32>
    %338 = arith.mulf %330, %311 : vector<8x32xf32>
    %339 = arith.mulf %325, %337 : vector<8x32xf32>
    %340 = arith.addf %338, %339 : vector<8x32xf32>
    %341 = math.tanh %340 : vector<8x32xf32>
    %342 = arith.mulf %335, %341 : vector<8x32xf32>
    %343 = vector.extract_strided_slice %279 {offsets = [16, 0], sizes = [8, 128], strides = [1, 1]} : vector<64x128xf32> to vector<8x128xf32>
    %344 = arith.truncf %342 : vector<8x32xf32> to vector<8x32xbf16>
    %cst_125 = arith.constant dense<0.000000e+00> : vector<8x128xf32>
    %345 = tpu.matmul %344, %280, %cst_125 {dimension_numbers = #tpu.dot_dimension_numbers<[1], [0], [0], [1], [0, 0, 1, 1], [], []>} : vector<8x32xbf16>, vector<32x128xbf16>, vector<8x128xf32> -> vector<8x128xf32>
    %346 = arith.addf %343, %345 : vector<8x128xf32>
    %cst_126 = arith.constant 5.000000e-01 : f32
    %347 = vector.broadcast %cst_126 : f32 to vector<8x128xf32>
    %348 = arith.mulf %347, %346 : vector<8x128xf32>
    %349 = math.tanh %348 : vector<8x128xf32>
    %350 = vector.extract_strided_slice %349 {offsets = [0, 0], sizes = [8, 32], strides = [1, 1]} : vector<8x128xf32> to vector<8x32xf32>
    %cst_127 = arith.constant 1.000000e+00 : f32
    %351 = vector.broadcast %cst_127 : f32 to vector<8x32xf32>
    %352 = arith.addf %351, %350 : vector<8x32xf32>
    %cst_128 = arith.constant 5.000000e-01 : f32
    %353 = vector.broadcast %cst_128 : f32 to vector<8x32xf32>
    %354 = arith.mulf %353, %352 : vector<8x32xf32>
    %355 = vector.extract_strided_slice %349 {offsets = [0, 32], sizes = [8, 32], strides = [1, 1]} : vector<8x128xf32> to vector<8x32xf32>
    %cst_129 = arith.constant 1.000000e+00 : f32
    %356 = vector.broadcast %cst_129 : f32 to vector<8x32xf32>
    %357 = arith.addf %356, %355 : vector<8x32xf32>
    %cst_130 = arith.constant 5.000000e-01 : f32
    %358 = vector.broadcast %cst_130 : f32 to vector<8x32xf32>
    %359 = arith.mulf %358, %357 : vector<8x32xf32>
    %360 = vector.extract_strided_slice %349 {offsets = [0, 96], sizes = [8, 32], strides = [1, 1]} : vector<8x128xf32> to vector<8x32xf32>
    %cst_131 = arith.constant 1.000000e+00 : f32
    %361 = vector.broadcast %cst_131 : f32 to vector<8x32xf32>
    %362 = arith.addf %361, %360 : vector<8x32xf32>
    %cst_132 = arith.constant 5.000000e-01 : f32
    %363 = vector.broadcast %cst_132 : f32 to vector<8x32xf32>
    %364 = arith.mulf %363, %362 : vector<8x32xf32>
    %365 = vector.extract_strided_slice %346 {offsets = [0, 64], sizes = [8, 32], strides = [1, 1]} : vector<8x128xf32> to vector<8x32xf32>
    %366 = math.tanh %365 : vector<8x32xf32>
    %367 = arith.mulf %359, %340 : vector<8x32xf32>
    %368 = arith.mulf %354, %366 : vector<8x32xf32>
    %369 = arith.addf %367, %368 : vector<8x32xf32>
    %370 = math.tanh %369 : vector<8x32xf32>
    %371 = arith.mulf %364, %370 : vector<8x32xf32>
    %372 = vector.extract_strided_slice %279 {offsets = [24, 0], sizes = [8, 128], strides = [1, 1]} : vector<64x128xf32> to vector<8x128xf32>
    %373 = arith.truncf %371 : vector<8x32xf32> to vector<8x32xbf16>
    %cst_133 = arith.constant dense<0.000000e+00> : vector<8x128xf32>
    %374 = tpu.matmul %373, %280, %cst_133 {dimension_numbers = #tpu.dot_dimension_numbers<[1], [0], [0], [1], [0, 0, 1, 1], [], []>} : vector<8x32xbf16>, vector<32x128xbf16>, vector<8x128xf32> -> vector<8x128xf32>
    %375 = arith.addf %372, %374 : vector<8x128xf32>
    %cst_134 = arith.constant 5.000000e-01 : f32
    %376 = vector.broadcast %cst_134 : f32 to vector<8x128xf32>
    %377 = arith.mulf %376, %375 : vector<8x128xf32>
    %378 = math.tanh %377 : vector<8x128xf32>
    %379 = vector.extract_strided_slice %378 {offsets = [0, 0], sizes = [8, 32], strides = [1, 1]} : vector<8x128xf32> to vector<8x32xf32>
    %cst_135 = arith.constant 1.000000e+00 : f32
    %380 = vector.broadcast %cst_135 : f32 to vector<8x32xf32>
    %381 = arith.addf %380, %379 : vector<8x32xf32>
    %cst_136 = arith.constant 5.000000e-01 : f32
    %382 = vector.broadcast %cst_136 : f32 to vector<8x32xf32>
    %383 = arith.mulf %382, %381 : vector<8x32xf32>
    %384 = vector.extract_strided_slice %378 {offsets = [0, 32], sizes = [8, 32], strides = [1, 1]} : vector<8x128xf32> to vector<8x32xf32>
    %cst_137 = arith.constant 1.000000e+00 : f32
    %385 = vector.broadcast %cst_137 : f32 to vector<8x32xf32>
    %386 = arith.addf %385, %384 : vector<8x32xf32>
    %cst_138 = arith.constant 5.000000e-01 : f32
    %387 = vector.broadcast %cst_138 : f32 to vector<8x32xf32>
    %388 = arith.mulf %387, %386 : vector<8x32xf32>
    %389 = vector.extract_strided_slice %378 {offsets = [0, 96], sizes = [8, 32], strides = [1, 1]} : vector<8x128xf32> to vector<8x32xf32>
    %cst_139 = arith.constant 1.000000e+00 : f32
    %390 = vector.broadcast %cst_139 : f32 to vector<8x32xf32>
    %391 = arith.addf %390, %389 : vector<8x32xf32>
    %cst_140 = arith.constant 5.000000e-01 : f32
    %392 = vector.broadcast %cst_140 : f32 to vector<8x32xf32>
    %393 = arith.mulf %392, %391 : vector<8x32xf32>
    %394 = vector.extract_strided_slice %375 {offsets = [0, 64], sizes = [8, 32], strides = [1, 1]} : vector<8x128xf32> to vector<8x32xf32>
    %395 = math.tanh %394 : vector<8x32xf32>
    %396 = arith.mulf %388, %369 : vector<8x32xf32>
    %397 = arith.mulf %383, %395 : vector<8x32xf32>
    %398 = arith.addf %396, %397 : vector<8x32xf32>
    %399 = math.tanh %398 : vector<8x32xf32>
    %400 = arith.mulf %393, %399 : vector<8x32xf32>
    %401 = vector.extract_strided_slice %279 {offsets = [32, 0], sizes = [8, 128], strides = [1, 1]} : vector<64x128xf32> to vector<8x128xf32>
    %402 = arith.truncf %400 : vector<8x32xf32> to vector<8x32xbf16>
    %cst_141 = arith.constant dense<0.000000e+00> : vector<8x128xf32>
    %403 = tpu.matmul %402, %280, %cst_141 {dimension_numbers = #tpu.dot_dimension_numbers<[1], [0], [0], [1], [0, 0, 1, 1], [], []>} : vector<8x32xbf16>, vector<32x128xbf16>, vector<8x128xf32> -> vector<8x128xf32>
    %404 = arith.addf %401, %403 : vector<8x128xf32>
    %cst_142 = arith.constant 5.000000e-01 : f32
    %405 = vector.broadcast %cst_142 : f32 to vector<8x128xf32>
    %406 = arith.mulf %405, %404 : vector<8x128xf32>
    %407 = math.tanh %406 : vector<8x128xf32>
    %408 = vector.extract_strided_slice %407 {offsets = [0, 0], sizes = [8, 32], strides = [1, 1]} : vector<8x128xf32> to vector<8x32xf32>
    %cst_143 = arith.constant 1.000000e+00 : f32
    %409 = vector.broadcast %cst_143 : f32 to vector<8x32xf32>
    %410 = arith.addf %409, %408 : vector<8x32xf32>
    %cst_144 = arith.constant 5.000000e-01 : f32
    %411 = vector.broadcast %cst_144 : f32 to vector<8x32xf32>
    %412 = arith.mulf %411, %410 : vector<8x32xf32>
    %413 = vector.extract_strided_slice %407 {offsets = [0, 32], sizes = [8, 32], strides = [1, 1]} : vector<8x128xf32> to vector<8x32xf32>
    %cst_145 = arith.constant 1.000000e+00 : f32
    %414 = vector.broadcast %cst_145 : f32 to vector<8x32xf32>
    %415 = arith.addf %414, %413 : vector<8x32xf32>
    %cst_146 = arith.constant 5.000000e-01 : f32
    %416 = vector.broadcast %cst_146 : f32 to vector<8x32xf32>
    %417 = arith.mulf %416, %415 : vector<8x32xf32>
    %418 = vector.extract_strided_slice %407 {offsets = [0, 96], sizes = [8, 32], strides = [1, 1]} : vector<8x128xf32> to vector<8x32xf32>
    %cst_147 = arith.constant 1.000000e+00 : f32
    %419 = vector.broadcast %cst_147 : f32 to vector<8x32xf32>
    %420 = arith.addf %419, %418 : vector<8x32xf32>
    %cst_148 = arith.constant 5.000000e-01 : f32
    %421 = vector.broadcast %cst_148 : f32 to vector<8x32xf32>
    %422 = arith.mulf %421, %420 : vector<8x32xf32>
    %423 = vector.extract_strided_slice %404 {offsets = [0, 64], sizes = [8, 32], strides = [1, 1]} : vector<8x128xf32> to vector<8x32xf32>
    %424 = math.tanh %423 : vector<8x32xf32>
    %425 = arith.mulf %417, %398 : vector<8x32xf32>
    %426 = arith.mulf %412, %424 : vector<8x32xf32>
    %427 = arith.addf %425, %426 : vector<8x32xf32>
    %428 = math.tanh %427 : vector<8x32xf32>
    %429 = arith.mulf %422, %428 : vector<8x32xf32>
    %430 = vector.extract_strided_slice %279 {offsets = [40, 0], sizes = [8, 128], strides = [1, 1]} : vector<64x128xf32> to vector<8x128xf32>
    %431 = arith.truncf %429 : vector<8x32xf32> to vector<8x32xbf16>
    %cst_149 = arith.constant dense<0.000000e+00> : vector<8x128xf32>
    %432 = tpu.matmul %431, %280, %cst_149 {dimension_numbers = #tpu.dot_dimension_numbers<[1], [0], [0], [1], [0, 0, 1, 1], [], []>} : vector<8x32xbf16>, vector<32x128xbf16>, vector<8x128xf32> -> vector<8x128xf32>
    %433 = arith.addf %430, %432 : vector<8x128xf32>
    %cst_150 = arith.constant 5.000000e-01 : f32
    %434 = vector.broadcast %cst_150 : f32 to vector<8x128xf32>
    %435 = arith.mulf %434, %433 : vector<8x128xf32>
    %436 = math.tanh %435 : vector<8x128xf32>
    %437 = vector.extract_strided_slice %436 {offsets = [0, 0], sizes = [8, 32], strides = [1, 1]} : vector<8x128xf32> to vector<8x32xf32>
    %cst_151 = arith.constant 1.000000e+00 : f32
    %438 = vector.broadcast %cst_151 : f32 to vector<8x32xf32>
    %439 = arith.addf %438, %437 : vector<8x32xf32>
    %cst_152 = arith.constant 5.000000e-01 : f32
    %440 = vector.broadcast %cst_152 : f32 to vector<8x32xf32>
    %441 = arith.mulf %440, %439 : vector<8x32xf32>
    %442 = vector.extract_strided_slice %436 {offsets = [0, 32], sizes = [8, 32], strides = [1, 1]} : vector<8x128xf32> to vector<8x32xf32>
    %cst_153 = arith.constant 1.000000e+00 : f32
    %443 = vector.broadcast %cst_153 : f32 to vector<8x32xf32>
    %444 = arith.addf %443, %442 : vector<8x32xf32>
    %cst_154 = arith.constant 5.000000e-01 : f32
    %445 = vector.broadcast %cst_154 : f32 to vector<8x32xf32>
    %446 = arith.mulf %445, %444 : vector<8x32xf32>
    %447 = vector.extract_strided_slice %436 {offsets = [0, 96], sizes = [8, 32], strides = [1, 1]} : vector<8x128xf32> to vector<8x32xf32>
    %cst_155 = arith.constant 1.000000e+00 : f32
    %448 = vector.broadcast %cst_155 : f32 to vector<8x32xf32>
    %449 = arith.addf %448, %447 : vector<8x32xf32>
    %cst_156 = arith.constant 5.000000e-01 : f32
    %450 = vector.broadcast %cst_156 : f32 to vector<8x32xf32>
    %451 = arith.mulf %450, %449 : vector<8x32xf32>
    %452 = vector.extract_strided_slice %433 {offsets = [0, 64], sizes = [8, 32], strides = [1, 1]} : vector<8x128xf32> to vector<8x32xf32>
    %453 = math.tanh %452 : vector<8x32xf32>
    %454 = arith.mulf %446, %427 : vector<8x32xf32>
    %455 = arith.mulf %441, %453 : vector<8x32xf32>
    %456 = arith.addf %454, %455 : vector<8x32xf32>
    %457 = math.tanh %456 : vector<8x32xf32>
    %458 = arith.mulf %451, %457 : vector<8x32xf32>
    %459 = vector.extract_strided_slice %279 {offsets = [48, 0], sizes = [8, 128], strides = [1, 1]} : vector<64x128xf32> to vector<8x128xf32>
    %460 = arith.truncf %458 : vector<8x32xf32> to vector<8x32xbf16>
    %cst_157 = arith.constant dense<0.000000e+00> : vector<8x128xf32>
    %461 = tpu.matmul %460, %280, %cst_157 {dimension_numbers = #tpu.dot_dimension_numbers<[1], [0], [0], [1], [0, 0, 1, 1], [], []>} : vector<8x32xbf16>, vector<32x128xbf16>, vector<8x128xf32> -> vector<8x128xf32>
    %462 = arith.addf %459, %461 : vector<8x128xf32>
    %cst_158 = arith.constant 5.000000e-01 : f32
    %463 = vector.broadcast %cst_158 : f32 to vector<8x128xf32>
    %464 = arith.mulf %463, %462 : vector<8x128xf32>
    %465 = math.tanh %464 : vector<8x128xf32>
    %466 = vector.extract_strided_slice %465 {offsets = [0, 0], sizes = [8, 32], strides = [1, 1]} : vector<8x128xf32> to vector<8x32xf32>
    %cst_159 = arith.constant 1.000000e+00 : f32
    %467 = vector.broadcast %cst_159 : f32 to vector<8x32xf32>
    %468 = arith.addf %467, %466 : vector<8x32xf32>
    %cst_160 = arith.constant 5.000000e-01 : f32
    %469 = vector.broadcast %cst_160 : f32 to vector<8x32xf32>
    %470 = arith.mulf %469, %468 : vector<8x32xf32>
    %471 = vector.extract_strided_slice %465 {offsets = [0, 32], sizes = [8, 32], strides = [1, 1]} : vector<8x128xf32> to vector<8x32xf32>
    %cst_161 = arith.constant 1.000000e+00 : f32
    %472 = vector.broadcast %cst_161 : f32 to vector<8x32xf32>
    %473 = arith.addf %472, %471 : vector<8x32xf32>
    %cst_162 = arith.constant 5.000000e-01 : f32
    %474 = vector.broadcast %cst_162 : f32 to vector<8x32xf32>
    %475 = arith.mulf %474, %473 : vector<8x32xf32>
    %476 = vector.extract_strided_slice %465 {offsets = [0, 96], sizes = [8, 32], strides = [1, 1]} : vector<8x128xf32> to vector<8x32xf32>
    %cst_163 = arith.constant 1.000000e+00 : f32
    %477 = vector.broadcast %cst_163 : f32 to vector<8x32xf32>
    %478 = arith.addf %477, %476 : vector<8x32xf32>
    %cst_164 = arith.constant 5.000000e-01 : f32
    %479 = vector.broadcast %cst_164 : f32 to vector<8x32xf32>
    %480 = arith.mulf %479, %478 : vector<8x32xf32>
    %481 = vector.extract_strided_slice %462 {offsets = [0, 64], sizes = [8, 32], strides = [1, 1]} : vector<8x128xf32> to vector<8x32xf32>
    %482 = math.tanh %481 : vector<8x32xf32>
    %483 = arith.mulf %475, %456 : vector<8x32xf32>
    %484 = arith.mulf %470, %482 : vector<8x32xf32>
    %485 = arith.addf %483, %484 : vector<8x32xf32>
    %486 = math.tanh %485 : vector<8x32xf32>
    %487 = arith.mulf %480, %486 : vector<8x32xf32>
    %488 = vector.extract_strided_slice %279 {offsets = [56, 0], sizes = [8, 128], strides = [1, 1]} : vector<64x128xf32> to vector<8x128xf32>
    %489 = arith.truncf %487 : vector<8x32xf32> to vector<8x32xbf16>
    %cst_165 = arith.constant dense<0.000000e+00> : vector<8x128xf32>
    %490 = tpu.matmul %489, %280, %cst_165 {dimension_numbers = #tpu.dot_dimension_numbers<[1], [0], [0], [1], [0, 0, 1, 1], [], []>} : vector<8x32xbf16>, vector<32x128xbf16>, vector<8x128xf32> -> vector<8x128xf32>
    %491 = arith.addf %488, %490 : vector<8x128xf32>
    %cst_166 = arith.constant 5.000000e-01 : f32
    %492 = vector.broadcast %cst_166 : f32 to vector<8x128xf32>
    %493 = arith.mulf %492, %491 : vector<8x128xf32>
    %494 = math.tanh %493 : vector<8x128xf32>
    %495 = vector.extract_strided_slice %494 {offsets = [0, 0], sizes = [8, 32], strides = [1, 1]} : vector<8x128xf32> to vector<8x32xf32>
    %cst_167 = arith.constant 1.000000e+00 : f32
    %496 = vector.broadcast %cst_167 : f32 to vector<8x32xf32>
    %497 = arith.addf %496, %495 : vector<8x32xf32>
    %cst_168 = arith.constant 5.000000e-01 : f32
    %498 = vector.broadcast %cst_168 : f32 to vector<8x32xf32>
    %499 = arith.mulf %498, %497 : vector<8x32xf32>
    %500 = vector.extract_strided_slice %494 {offsets = [0, 32], sizes = [8, 32], strides = [1, 1]} : vector<8x128xf32> to vector<8x32xf32>
    %cst_169 = arith.constant 1.000000e+00 : f32
    %501 = vector.broadcast %cst_169 : f32 to vector<8x32xf32>
    %502 = arith.addf %501, %500 : vector<8x32xf32>
    %cst_170 = arith.constant 5.000000e-01 : f32
    %503 = vector.broadcast %cst_170 : f32 to vector<8x32xf32>
    %504 = arith.mulf %503, %502 : vector<8x32xf32>
    %505 = vector.extract_strided_slice %494 {offsets = [0, 96], sizes = [8, 32], strides = [1, 1]} : vector<8x128xf32> to vector<8x32xf32>
    %cst_171 = arith.constant 1.000000e+00 : f32
    %506 = vector.broadcast %cst_171 : f32 to vector<8x32xf32>
    %507 = arith.addf %506, %505 : vector<8x32xf32>
    %cst_172 = arith.constant 5.000000e-01 : f32
    %508 = vector.broadcast %cst_172 : f32 to vector<8x32xf32>
    %509 = arith.mulf %508, %507 : vector<8x32xf32>
    %510 = vector.extract_strided_slice %491 {offsets = [0, 64], sizes = [8, 32], strides = [1, 1]} : vector<8x128xf32> to vector<8x32xf32>
    %511 = math.tanh %510 : vector<8x32xf32>
    %512 = arith.mulf %504, %485 : vector<8x32xf32>
    %513 = arith.mulf %499, %511 : vector<8x32xf32>
    %514 = arith.addf %512, %513 : vector<8x32xf32>
    %515 = math.tanh %514 : vector<8x32xf32>
    %516 = arith.mulf %509, %515 : vector<8x32xf32>
    %c1_173 = arith.constant 1 : index
    %c0_174 = arith.constant 0 : index
    %c0_175 = arith.constant 0 : index
    %517 = vector.load %arg13[%c1_173, %c0_174, %c0_175] : memref<2x8x32xf32, #tpu.memory_space<vmem>>, vector<1x8x32xf32>
    %518 = vector.shape_cast %517 : vector<1x8x32xf32> to vector<8x32xf32>
    %519 = vector.shape_cast %516 : vector<8x32xf32> to vector<1x8x32xf32>
    tpu.vector_store %arg13[%c1_173, %c0_174, %c0_175], %519 {strides = array<i32>} : memref<2x8x32xf32, #tpu.memory_space<vmem>>, vector<1x8x32xf32>,
    %c1_176 = arith.constant 1 : index
    %c0_177 = arith.constant 0 : index
    %c0_178 = arith.constant 0 : index
    %520 = vector.load %arg14[%c1_176, %c0_177, %c0_178] : memref<2x8x32xf32, #tpu.memory_space<vmem>>, vector<1x8x32xf32>
    %521 = vector.shape_cast %520 : vector<1x8x32xf32> to vector<8x32xf32>
    %522 = vector.shape_cast %514 : vector<8x32xf32> to vector<1x8x32xf32>
    tpu.vector_store %arg14[%c1_176, %c0_177, %c0_178], %522 {strides = array<i32>} : memref<2x8x32xf32, #tpu.memory_space<vmem>>, vector<1x8x32xf32>,
    %523 = arith.truncf %516 : vector<8x32xf32> to vector<8x32xbf16>
    %c0_179 = arith.constant 0 : index
    %c0_180 = arith.constant 0 : index
    %524 = vector.load %arg10[%c0_179, %c0_180] : memref<32x128xbf16, #tpu.memory_space<vmem>>, vector<32x128xbf16>
    %cst_181 = arith.constant dense<0.000000e+00> : vector<8x128xf32>
    %525 = tpu.matmul %523, %524, %cst_181 {dimension_numbers = #tpu.dot_dimension_numbers<[1], [0], [0], [1], [0, 0, 1, 1], [], []>} : vector<8x32xbf16>, vector<32x128xbf16>, vector<8x128xf32> -> vector<8x128xf32>
    %c0_182 = arith.constant 0 : index
    %c0_183 = arith.constant 0 : index
    %526 = vector.load %arg11[%c0_182, %c0_183] : memref<1x128xf32, #tpu.memory_space<vmem>>, vector<1x128xf32>
    %527 = vector.broadcast %526 : vector<1x128xf32> to vector<8x128xf32>
    %528 = arith.addf %525, %527 : vector<8x128xf32>
    %c0_184 = arith.constant 0 : index
    %c0_185 = arith.constant 0 : index
    %529 = vector.load %arg12[%c0_184, %c0_185] : memref<8x128xf32, #tpu.memory_space<vmem>>, vector<8x128xf32>
    tpu.vector_store %arg12[%c0_184, %c0_185], %528 {strides = array<i32>} : memref<8x128xf32, #tpu.memory_space<vmem>>, vector<8x128xf32>,
    return
  }
}

</mosaic_0001>

<bundles_post_ra>
// kernel: rnn_forward.1
= control target key start
LH: loop header
LB: loop body
LE: loop exit
PB: predicated region body
PF: predicated region fallthrough
CT: control target
= control target key end

     0   :  { %v2147_v0 = vmov 0   ;;  %vm148_vm0 = vcmask 1040384   ;;  %v2148_v15 = vmov 0.0   ;;  %v53_v16 = vlaneseq  ;;  %s2150_s28 = smov 32   ;;  %s2632_s0 = inlined_call_operand.vmem [shape: s32[64,1], index: 0, kind: input, shape index: {}]   ;;  %s2633_s1 = inlined_call_operand.vmem [shape: bf16[50,32], index: 1, kind: input, shape index: {}]   ;;  %s2634_s2 = inlined_call_operand.vmem [shape: bf16[32,128], index: 2, kind: input, shape index: {}]   ;;  %s2635_s3 = inlined_call_operand.vmem [shape: bf16[32,128], index: 3, kind: input, shape index: {}]   ;;  %s2636_s9 = inlined_call_operand.vmem [shape: f32[2,8,32], index: 9, kind: input, shape index: {}]   ;;  %s2637_s8 = inlined_call_operand.vmem [shape: f32[2,8,32], index: 8, kind: input, shape index: {}]   ;;  %s2638_s4 = inlined_call_operand.vmem [shape: f32[1,128], index: 4, kind: input, shape index: {}]   ;;  %s2639_s5 = inlined_call_operand.vmem [shape: bf16[32,128], index: 5, kind: input, shape index: {}]   ;;  %s2640_s6 = inlined_call_operand.vmem [shape: bf16[32,128], index: 6, kind: input, shape index: {}]   ;;  %s2641_s7 = inlined_call_operand.vmem [shape: f32[1,128], index: 7, kind: input, shape index: {}]   ;;  %s2642_s10 = inlined_call_operand.vmem [shape: bf16[32,128], index: 10, kind: input, shape index: {}]   ;;  %s2643_s13 = inlined_call_operand.vmem [shape: f32[2,8,32], index: 13, kind: output, shape index: {1}]   ;;  %s2644_s14 = inlined_call_operand.vmem [shape: f32[2,8,32], index: 14, kind: output, shape index: {2}]   ;;  %s2645_s11 = inlined_call_operand.vmem [shape: f32[1,128], index: 11, kind: input, shape index: {}]   ;;  %s2646_s12 = inlined_call_operand.vmem [shape: f32[8,128], index: 12, kind: output, shape index: {0}]  }
   0x1   :  { %2036 = vset.pattern.permute.xlu1 %v2147_v0  ;;  %2035 = vset.pattern.permute.xlu0 %v2147_v0  ;;  %v47_v1 = vld [vmem:[%s2632_s0 + $0x10] sm:$0xff]  ;;  %v45_v2 = vld [vmem:[%s2632_s0] sm:$0xff]  ;;  %v48_v3 = vld [vmem:[%s2632_s0 + $0x18] sm:$0xff]  ;;  %vm135_vm5 = vcmask 408576   ;;  %vm2149_vm10 = vmmov 0   ;;  %vm244_vm11 = vcmask 261120  }
   0x2   :  { %62 = vperm.xlu1 %2036, %v47_v1   ;;  %56 = vperm.xlu0 %2035, %v45_v2   ;;  %v46_v4 = vld [vmem:[%s2632_s0 + $0x8] sm:$0xff]  ;;  %v2037_v5 = vld [vmem:[%s2633_s1] sm:$0xff]   ;;  %v2039_v9 = vld [vmem:[%s2633_s1 + $0x10] sm:$0xff]   ;;  %v54_v17 = vand.u32 127, %v53_v16  ;;  %vm416_vm12 = vcmask 257024   ;;  %vm490_vm13 = vcmask 261124  }
   0x3   :  { %v2038_v6 = vld [vmem:[%s2633_s1 + $0x8] sm:$0xff]   ;;  %v49_v8 = vld [vmem:[%s2632_s0 + $0x20] sm:$0xff]  ;;  %1852 = vmatprep.subr.bf16.mxu0 %v2037_v5  ;;  %v52_v10 = vld [vmem:[%s2632_s0 + $0x38] sm:$0xff] }
   0x4   :  { %v50_v7 = vld [vmem:[%s2632_s0 + $0x28] sm:$0xff]  ;;  %1853 = vmatpush3.bf16.msra.mxu0 %v2037_v5  ;;  %v51_v11 = vld [vmem:[%s2632_s0 + $0x30] sm:$0xff]  ;;  %v2040_v12 = vld [vmem:[%s2633_s1 + $0x18] ss:$0 sps:$4 sm:$0x11]  }
   0x5   :  { %1854 = vmatprep.subr.bf16.mxu0 %v2038_v6  ;;  %v150_v13 = vsel %vm148_vm0, %v2040_v12, 0  ;;  %v2041_v14 = vld [vmem:[%s2634_s2] sm:$0xff]   ;;  %v2042_v38 = vld [vmem:[%s2634_s2 + $0x8] sm:$0xff]  }
   0x6   :  { %65 = vperm.xlu1 %2036, %v48_v3   ;;  %59 = vperm.xlu0 %2035, %v46_v4   ;;  %v2287_v39 = vld [vmem:[%s2635_s3] sm:$0xff]   ;;  %v2294_v40 = vld [vmem:[%s2635_s3 + $0x8] sm:$0xff]  }
   0x7   :  { %1868 = vmatprep.subr.bf16.mxu1 %v2041_v14  ;;  %v327_v41 = vld [vmem:[%s2636_s9] sm:$0xff] }
   0x8   :  { %1855 = vmatpush3.bf16.msra.mxu0 %v2038_v6  ;;  %1869 = vmatpush3.bf16.msra.mxu1 %v2041_v14  ;;  %v326_v54 = vld [vmem:[%s2637_s8] sm:$0xff] }
   0x9   :  { %1856 = vmatprep.subr.bf16.mxu0 %v2039_v9  ;;  %1870 = vmatprep.subr.bf16.mxu1 %v2042_v38  ;;  %v328_v55 = vpack.c.bf16 %v326_v54, %v326_v54  ;;  %v1739_v56 = vld [vmem:[%s2638_s4] ss:$0 sm:$0xff]  ;;  %s2151_s4 = smov 64  }
   0xa   :  { %71 = vperm.xlu1 %2036, %v50_v7   ;;  %68 = vperm.xlu0 %2035, %v49_v8  }
   0xc   :  { %1857 = vmatpush3.bf16.msra.mxu0 %v2039_v9  ;;  %1871 = vmatpush3.bf16.msra.mxu1 %v2042_v38 }
   0xd   :  { %2028 = vmatprep.subr.msk.bf16.mxu0 %vm148_vm0, %v2040_v12  ;;  %1880 = vmatprep.subr.bf16.mxu1 %v2148_v15 }
   0xe   :  { %77 = vperm.xlu1 %2036, %v52_v10   ;;  %74 = vperm.xlu0 %2035, %v51_v11  }
  0x10   :  { %1859 = vmatpush3.bf16.msra.mxu0 %v150_v13 }
  0x11   :  { %1888 = vmatprep.subr.bf16.mxu0 %v2148_v15 }
  0x12   :  { %391 = vrot.lane.b32.xlu1 %v327_v41, %s2150_s28 }
  0x81   :  { %v63_v18 = vpop.permute.xlu1 %62  ;;  %v57_v19 = vpop.permute.xlu0 %56 }
  0x82   :  { %vm81_vm1 = vcmp.eq.s32.totalorder %v63_v18, %v54_v17  ;;  %vm79_vm2 = vcmp.eq.s32.totalorder %v57_v19, %v54_v17 }
  0x83   :  { %v1725_v22 = vsel %vm81_vm1, 1.0, %v2148_v15  ;;  %v1723_v23 = vsel %vm79_vm2, 1.0, %v2148_v15 }
  0x85   :  { %v66_v20 = vpop.permute.xlu1 %65  ;;  %v60_v21 = vpop.permute.xlu0 %59 }
  0x86   :  { %vm82_vm3 = vcmp.eq.s32.totalorder %v66_v20, %v54_v17  ;;  %vm80_vm4 = vcmp.eq.s32.totalorder %v60_v21, %v54_v17 }
  0x87   :  { %v1726_v24 = vsel %vm82_vm3, 1.0, %v2148_v15  ;;  %v1724_v25 = vsel %vm80_vm4, 1.0, %v2148_v15 }
  0x88   :  { %v104_v26 = vpack.c.bf16 %v1726_v24, %v1725_v22  ;;  %v103_v27 = vpack.c.bf16 %v1724_v25, %v1723_v23 }
  0x89   :  { %v72_v28 = vpop.permute.xlu1 %71  ;;  %v69_v29 = vpop.permute.xlu0 %68 }
  0x8a   :  { %vm84_vm6 = vcmp.eq.s32.totalorder %v72_v28, %v54_v17  ;;  %vm83_vm7 = vcmp.eq.s32.totalorder %v69_v29, %v54_v17  ;;  %1860 = vmatprep.mubr.msk.bf16.mxu0 %vm135_vm5, %v103_v27 }
  0x8b   :  { %v1728_v30 = vsel %vm84_vm6, 1.0, %v2148_v15  ;;  %v1727_v31 = vsel %vm83_vm7, 1.0, %v2148_v15  ;;  %1861 = vmatmul.mubr.msk.bf16.vlgmr.msra.gmra.mrb[0].mxu0 %vm135_vm5, %v104_v26 }
  0x8c   :  { %v105_v32 = vpack.c.bf16 %v1728_v30, %v1727_v31  ;;  %1889 = vmatpush3.bf16.msra.mxu0 %v2287_v39 }
  0x8d   :  { %v78_v33 = vpop.permute.xlu1 %77  ;;  %v75_v34 = vpop.permute.xlu0 %74  ;;  %1890 = vmatprep.subr.bf16.mxu0 %v2148_v15 }
  0x8e   :  { %vm86_vm8 = vcmp.eq.s32.totalorder %v78_v33, %v54_v17  ;;  %vm85_vm9 = vcmp.eq.s32.totalorder %v75_v34, %v54_v17  ;;  %1864 = vmatprep.mubr.msk.bf16.mxu0 %vm135_vm5, %v105_v32 }
  0x8f   :  { %v1730_v35 = vsel %vm86_vm8, 1.0, %v2148_v15  ;;  %v1729_v36 = vsel %vm85_vm9, 1.0, %v2148_v15 }
  0x90   :  { %v106_v37 = vpack.c.bf16 %v1730_v35, %v1729_v36  ;;  %1891 = vmatpush3.bf16.msra.mxu0 %v2294_v40 }
  0x91   :  { %1904 = vmatprep.subr.bf16.mxu0 %v2148_v15  ;;  %v392_v22 = vpop.permute.xlu1 %391 }
  0x93   :  { %1865 = vmatmul.mubr.msk.bf16.gmra.mrb[4].mxu0 %vm135_vm5, %v106_v37 }
  0x94   :  { %1892 = vmatprep.mubr.msk.bf16.mxu0 %vm2149_vm10, %v2148_v15 }
 0x15e   :  { %v1862_v42 = vpop.f32.mrb[0].mxu0 }
 0x15f   :  { %v186_v43 = vpop.f32.mrb[1].mxu0 }
 0x160   :  { %v1863_v44 = vpop.f32.mrb[2].mxu0 }
 0x161   :  { %v218_v45 = vpack.c.bf16 %v1863_v44, %v1862_v42  ;;  %v189_v46 = vpop.f32.mrb[3].mxu0 }
 0x162   :  { %v217_v47 = vpack.c.bf16 %v189_v46, %v186_v43 }
 0x164   :  { %1872 = vmatprep.mubr.msk.bf16.mxu1 %vm244_vm11, %v217_v47 }
 0x165   :  { %1873 = vmatmul.mubr.msk.bf16.vlgmr.msra.gmra.mrb[0].mxu1 %vm244_vm11, %v218_v45 }
 0x166   :  { %1881 = vmatpush3.bf16.msra.mxu1 %v2287_v39  ;;  %v1866_v48 = vpop.f32.mrb[4].mxu0 }
 0x167   :  { %v202_v49 = vpop.f32.mrb[5].mxu0  ;;  %1882 = vmatprep.subr.bf16.mxu1 %v2148_v15 }
 0x168   :  { %v1867_v50 = vpop.f32.mrb[6].mxu0 }
 0x169   :  { %v220_v51 = vpack.c.bf16 %v1867_v50, %v1866_v48  ;;  %v205_v52 = vpop.f32.mrb[7].mxu0 }
 0x16a   :  { %v219_v53 = vpack.c.bf16 %v205_v52, %v202_v49  ;;  %1883 = vmatpush3.bf16.msra.mxu1 %v2294_v40 }
 0x16b   :  { %1896 = vmatprep.subr.bf16.mxu1 %v2148_v15 }
 0x16c   :  { %1876 = vmatprep.mubr.msk.bf16.mxu1 %vm244_vm11, %v219_v53 }
 0x16d   :  { %1877 = vmatmul.mubr.msk.bf16.gmra.mrb[4].mxu1 %vm244_vm11, %v220_v51 }
 0x16e   :  { %1884 = vmatprep.mubr.msk.bf16.mxu1 %vm2149_vm10, %v2148_v15 }
 0x175   :  { %1885 = vmatmul.mubr.msk.bf16.vlgmr.msra.gmra.mrb[8].mxu1 %vm244_vm11, %v328_v55 }
 0x176   :  { %1897 = vmatpush3.bf16.msra.mxu1 %v2287_v39  ;;  %1900 = vmatprep.mubr.msk.bf16.mxu1 %vm2149_vm10, %v2148_v15 }
 0x177   :  { %1898 = vmatprep.subr.bf16.mxu1 %v2148_v15 }
 0x17a   :  { %1899 = vmatpush3.bf16.msra.mxu1 %v2294_v40 }
 0x17b   :  { %1912 = vmatprep.subr.bf16.mxu1 %v2148_v15 }
 0x238   :  { %v1874_v57 = vpop.f32.mrb[0].mxu1 }
 0x239   :  { %v2327_v58 = vadd.f32 %v1874_v57, %v1739_v56  ;;  %v291_v59 = vpop.f32.mrb[1].mxu1 }
 0x23a   :  { %v1875_v60 = vpop.f32.mrb[2].mxu1  ;;  %v292_v8 = vadd.f32 %v1739_v56, %v291_v59 }
 0x23b   :  { %v2329_v61 = vadd.f32 %v1875_v60, %v1739_v56  ;;  %v294_v62 = vpop.f32.mrb[3].mxu1 }
 0x23c   :  { %v295_v63 = vadd.f32 %v1739_v56, %v294_v62 }
 0x240   :  { %v1878_v0 = vpop.f32.mrb[4].mxu1 }
 0x241   :  { %v2331_v1 = vadd.f32 %v1878_v0, %v1739_v56  ;;  %v307_v2 = vpop.f32.mrb[5].mxu1 }
 0x242   :  { %v2333_v3 = vadd.f32 %v1739_v56, %v307_v2  ;;  %v1879_v4 = vpop.f32.mrb[6].mxu1 }
 0x243   :  { %v2335_v5 = vadd.f32 %v1879_v4, %v1739_v56  ;;  %v310_v6 = vpop.f32.mrb[7].mxu1 }
 0x244   :  { %v2337_v7 = vadd.f32 %v1739_v56, %v310_v6 }
 0x248   :  { %v378_v9 = vpop.f32.mrb[8].mxu1 }
 0x249   :  { %v384_v10 = vadd.f32 %v378_v9, %v292_v8  ;;  %v1886_v11 = vpop.f32.mrb[9].mxu1 }
 0x24a   :  { %v381_v12 = vpop.f32.mrb[10].mxu1 }
 0x24b   :  { %2051 = vtanh.f32 %v384_v10  ;;  %v1887_v13 = vpop.f32.mrb[11].mxu1  ;;  %v385_v16 = vmul.f32 0.5, %v384_v10 }
 0x24d   :  { %2053 = vtanh.f32 %v385_v16 }
 0x255   :  { %v2052_v14 = vpop.eup %2051 }
 0x256   :  { %396 = vrot.lane.b32.xlu0 %v2052_v14, %s2151_s4 }
 0x257   :  { %v2054_v17 = vpop.eup %2053 }
 0x258   :  { %v387_v18 = vadd.f32 1.0, %v2054_v17 }
 0x25a   :  { %v388_v19 = vmul.f32 0.5, %v387_v18 }
 0x25c   :  { %v394_v23 = vmul.f32 %v392_v22, %v388_v19 }
 0x2c8   :  { %v397_v20 = vpop.permute.xlu0 %396 }
 0x2c9   :  { %v399_v21 = vmul.f32 %v397_v20, %v388_v19 }
 0x2cb   :  { %401 = vrot.lane.b32.xlu0 %v399_v21, %s2150_s28 }
 0x33d   :  { %v402_v24 = vpop.permute.xlu0 %401 }
 0x33e   :  { %v404_v25 = vadd.f32 %v402_v24, %v394_v23 }
 0x340   :  { %2055 = vtanh.f32 %v404_v25 }
 0x34a   :  { %v2056_v26 = vpop.eup %2055 }
 0x34b   :  { %407 = vrot.lane.b32.xlu1 %v2056_v26, %s2151_s4 }
 0x3bd   :  { %v408_v27 = vpop.permute.xlu1 %407 }
 0x3be   :  { %v410_v28 = vmul.f32 %v408_v27, %v388_v19 }
 0x3c0   :  { %v411_v29 = vpack.c.bf16 %v410_v28, %v410_v28 }
 0x3c2   :  { %413 = vrot.lane.b32.xlu0 %v411_v29, %s2150_s28 }
 0x434   :  { %v414_v30 = vpop.permute.xlu0 %413 }
 0x435   :  { %417 = vst.msk [vmem:[#allocation2] sm:$0xf] %vm416_vm12, %v414_v30  ;;  %1893 = vmatmul.mubr.msk.bf16.vlgmr.msra.gmra.mrb[8].mxu0 %vm244_vm11, %v414_v30 }
 0x436   :  { %1905 = vmatpush3.bf16.msra.mxu0 %v2287_v39  ;;  %1908 = vmatprep.mubr.msk.bf16.mxu0 %vm2149_vm10, %v2148_v15 }
 0x437   :  { %1906 = vmatprep.subr.bf16.mxu0 %v2148_v15 }
 0x43a   :  { %1907 = vmatpush3.bf16.msra.mxu0 %v2294_v40 }
 0x43b   :  { %1920 = vmatprep.subr.bf16.mxu0 %v2148_v15 }
 0x508   :  { %v455_v31 = vpop.f32.mrb[8].mxu0 }
 0x509   :  { %v461_v32 = vadd.f32 %v455_v31, %v295_v63  ;;  %v1894_v33 = vpop.f32.mrb[9].mxu0 }
 0x50a   :  { %v458_v34 = vpop.f32.mrb[10].mxu0 }
 0x50b   :  { %2057 = vtanh.f32 %v461_v32  ;;  %v1895_v35 = vpop.f32.mrb[11].mxu0  ;;  %v462_v37 = vmul.f32 0.5, %v461_v32 }
 0x50d   :  { %2059 = vtanh.f32 %v462_v37 }
 0x515   :  { %v2058_v36 = vpop.eup %2057 }
 0x516   :  { %469 = vrot.lane.b32.xlu1 %v2058_v36, %s2151_s4 }
 0x517   :  { %v2060_v38 = vpop.eup %2059 }
 0x518   :  { %v464_v41 = vadd.f32 1.0, %v2060_v38 }
 0x51a   :  { %v465_v42 = vmul.f32 0.5, %v464_v41 }
 0x51c   :  { %v467_v45 = vmul.f32 %v465_v42, %v404_v25 }
 0x588   :  { %v470_v43 = vpop.permute.xlu1 %469 }
 0x589   :  { %v472_v44 = vmul.f32 %v470_v43, %v465_v42 }
 0x58b   :  { %474 = vrot.lane.b32.xlu0 %v472_v44, %s2150_s28 }
 0x5fd   :  { %v475_v46 = vpop.permute.xlu0 %474 }
 0x5fe   :  { %v477_v47 = vadd.f32 %v475_v46, %v467_v45 }
 0x600   :  { %2061 = vtanh.f32 %v477_v47 }
 0x60a   :  { %v2062_v48 = vpop.eup %2061 }
 0x60b   :  { %480 = vrot.lane.b32.xlu1 %v2062_v48, %s2151_s4 }
 0x67d   :  { %v481_v49 = vpop.permute.xlu1 %480 }
 0x67e   :  { %v483_v50 = vmul.f32 %v481_v49, %v465_v42 }
 0x680   :  { %v2354_v51 = vpack.c.bf16 %v483_v50, %v483_v50 }
 0x682   :  { %492 = vrot.lane.b32.xlu0 %v2354_v51, %s2150_s28 }
 0x6f4   :  { %v493_v52 = vpop.permute.xlu0 %492 }
 0x6f5   :  { %1901 = vmatmul.mubr.msk.bf16.vlgmr.msra.gmra.mrb[12].mxu1 %vm244_vm11, %v493_v52 }
 0x6f6   :  { %1913 = vmatpush3.bf16.msra.mxu1 %v2287_v39  ;;  %1916 = vmatprep.mubr.msk.bf16.mxu1 %vm2149_vm10, %v2148_v15 }
 0x6f7   :  { %1914 = vmatprep.subr.bf16.mxu1 %v2148_v15 }
 0x6fa   :  { %1915 = vmatpush3.bf16.msra.mxu1 %v2294_v40 }
 0x6fb   :  { %1928 = vmatprep.subr.bf16.mxu1 %v2148_v15 }
 0x7c8   :  { %v531_v53 = vpop.f32.mrb[12].mxu1 }
 0x7c9   :  { %v537_v54 = vadd.f32 %v531_v53, %v2327_v58  ;;  %v1902_v55 = vpop.f32.mrb[13].mxu1 }
 0x7ca   :  { %v534_v56 = vpop.f32.mrb[14].mxu1 }
 0x7cb   :  { %2063 = vtanh.f32 %v537_v54  ;;  %v1903_v57 = vpop.f32.mrb[15].mxu1  ;;  %v538_v60 = vmul.f32 0.5, %v537_v54 }
 0x7cd   :  { %2065 = vtanh.f32 %v538_v60 }
 0x7d5   :  { %v2064_v59 = vpop.eup %2063 }
 0x7d6   :  { %545 = vrot.lane.b32.xlu1 %v2064_v59, %s2151_s4 }
 0x7d7   :  { %v2066_v62 = vpop.eup %2065 }
 0x7d8   :  { %v540_v63 = vadd.f32 1.0, %v2066_v62 }
 0x7da   :  { %v541_v0 = vmul.f32 0.5, %v540_v63 }
 0x7dc   :  { %v543_v6 = vmul.f32 %v541_v0, %v477_v47 }
 0x848   :  { %v546_v2 = vpop.permute.xlu1 %545 }
 0x849   :  { %v548_v4 = vmul.f32 %v546_v2, %v541_v0 }
 0x84b   :  { %550 = vrot.lane.b32.xlu0 %v548_v4, %s2150_s28 }
 0x8bd   :  { %v551_v8 = vpop.permute.xlu0 %550 }
 0x8be   :  { %v553_v9 = vadd.f32 %v551_v8, %v543_v6 }
 0x8c0   :  { %2067 = vtanh.f32 %v553_v9 }
 0x8ca   :  { %v2068_v58 = vpop.eup %2067 }
 0x8cb   :  { %556 = vrot.lane.b32.xlu1 %v2068_v58, %s2151_s4 }
 0x93d   :  { %v557_v10 = vpop.permute.xlu1 %556 }
 0x93e   :  { %v559_v11 = vmul.f32 %v557_v10, %v541_v0 }
 0x940   :  { %v560_v12 = vpack.c.bf16 %v559_v11, %v559_v11 }
 0x942   :  { %562 = vrot.lane.b32.xlu0 %v560_v12, %s2150_s28 }
 0x9b4   :  { %v563_v13 = vpop.permute.xlu0 %562 }
 0x9b5   :  { %565 = vst.msk [vmem:[#allocation2 + $0x8] sm:$0xf] %vm416_vm12, %v563_v13  ;;  %1909 = vmatmul.mubr.msk.bf16.vlgmr.msra.gmra.mrb[12].mxu0 %vm244_vm11, %v563_v13 }
 0x9b6   :  { %1921 = vmatpush3.bf16.msra.mxu0 %v2287_v39  ;;  %1924 = vmatprep.mubr.msk.bf16.mxu0 %vm2149_vm10, %v2148_v15 }
 0x9b7   :  { %1922 = vmatprep.subr.bf16.mxu0 %v2148_v15 }
 0x9ba   :  { %1923 = vmatpush3.bf16.msra.mxu0 %v2294_v40 }
 0x9bb   :  { %1936 = vmatprep.subr.bf16.mxu0 %v2148_v15 }
 0xa88   :  { %v603_v14 = vpop.f32.mrb[12].mxu0 }
 0xa89   :  { %v609_v16 = vadd.f32 %v603_v14, %v2329_v61  ;;  %v1910_v17 = vpop.f32.mrb[13].mxu0 }
 0xa8a   :  { %v606_v18 = vpop.f32.mrb[14].mxu0 }
 0xa8b   :  { %2069 = vtanh.f32 %v609_v16  ;;  %v1911_v19 = vpop.f32.mrb[15].mxu0  ;;  %v610_v21 = vmul.f32 0.5, %v609_v16 }
 0xa8d   :  { %2071 = vtanh.f32 %v610_v21 }
 0xa95   :  { %v2070_v20 = vpop.eup %2069 }
 0xa96   :  { %617 = vrot.lane.b32.xlu1 %v2070_v20, %s2151_s4 }
 0xa97   :  { %v2072_v22 = vpop.eup %2071 }
 0xa98   :  { %v612_v23 = vadd.f32 1.0, %v2072_v22 }
 0xa9a   :  { %v613_v24 = vmul.f32 0.5, %v612_v23 }
 0xa9c   :  { %v615_v27 = vmul.f32 %v613_v24, %v553_v9 }
 0xb08   :  { %v618_v25 = vpop.permute.xlu1 %617 }
 0xb09   :  { %v620_v26 = vmul.f32 %v618_v25, %v613_v24 }
 0xb0b   :  { %622 = vrot.lane.b32.xlu0 %v620_v26, %s2150_s28 }
 0xb7d   :  { %v623_v28 = vpop.permute.xlu0 %622 }
 0xb7e   :  { %v625_v29 = vadd.f32 %v623_v28, %v615_v27  ;;  %v486_v27 = vrot.slane %v2354_v51, 4  ;;  %v2046_v51 = vld [vmem:[%s2639_s5 + $0x8] sm:$0xff]  }
 0xb80   :  { %2073 = vtanh.f32 %v625_v29 }
 0xb8a   :  { %v2074_v61 = vpop.eup %2073 }
 0xb8b   :  { %628 = vrot.lane.b32.xlu1 %v2074_v61, %s2151_s4  ;;  %v2045_v61 = vld [vmem:[%s2639_s5] sm:$0xff]  }
 0xbfd   :  { %v629_v30 = vpop.permute.xlu1 %628 }
 0xbfe   :  { %v631_v31 = vmul.f32 %v629_v30, %v613_v24 }
 0xc00   :  { %v2382_v32 = vpack.c.bf16 %v631_v31, %v631_v31 }
 0xc02   :  { %639 = vrot.lane.b32.xlu0 %v2382_v32, %s2150_s28 }
 0xc74   :  { %v640_v33 = vpop.permute.xlu0 %639 }
 0xc75   :  { %1917 = vmatmul.mubr.msk.bf16.vlgmr.msra.gmra.mrb[16].mxu1 %vm244_vm11, %v640_v33 }
 0xc76   :  { %1929 = vmatpush3.bf16.msra.mxu1 %v2287_v39  ;;  %1932 = vmatprep.mubr.msk.bf16.mxu1 %vm2149_vm10, %v2148_v15 }
 0xc77   :  { %1930 = vmatprep.subr.bf16.mxu1 %v2148_v15 }
 0xc7a   :  { %1931 = vmatpush3.bf16.msra.mxu1 %v2294_v40 }
 0xc7b   :  { %1944 = vmatprep.subr.bf16.mxu1 %v2045_v61 }
 0xd48   :  { %v678_v34 = vpop.f32.mrb[16].mxu1 }
 0xd49   :  { %v684_v35 = vadd.f32 %v678_v34, %v2333_v3  ;;  %v1918_v36 = vpop.f32.mrb[17].mxu1  ;;  %v634_v34 = vrot.slane %v2382_v32, 4  ;;  %v2447_v32 = vld [vmem:[%s2640_s6 + $0x8] sm:$0xff]  }
 0xd4a   :  { %v681_v37 = vpop.f32.mrb[18].mxu1 }
 0xd4b   :  { %2075 = vtanh.f32 %v684_v35  ;;  %v1919_v38 = vpop.f32.mrb[19].mxu1  ;;  %v685_v42 = vmul.f32 0.5, %v684_v35 }
 0xd4d   :  { %2077 = vtanh.f32 %v685_v42  ;;  %v2439_v42 = vld [vmem:[%s2640_s6] sm:$0xff]  }
 0xd55   :  { %v2076_v41 = vpop.eup %2075 }
 0xd56   :  { %692 = vrot.lane.b32.xlu1 %v2076_v41, %s2151_s4 }
 0xd57   :  { %v2078_v43 = vpop.eup %2077 }
 0xd58   :  { %v687_v44 = vadd.f32 1.0, %v2078_v43  ;;  %v1764_v43 = vld [vmem:[%s2636_s9 + $0x8] sm:$0xff] }
 0xd5a   :  { %v688_v45 = vmul.f32 0.5, %v687_v44 }
 0xd5c   :  { %v690_v48 = vmul.f32 %v688_v45, %v625_v29 }
 0xdc8   :  { %v693_v46 = vpop.permute.xlu1 %692 }
 0xdc9   :  { %v695_v47 = vmul.f32 %v693_v46, %v688_v45 }
 0xdcb   :  { %697 = vrot.lane.b32.xlu0 %v695_v47, %s2150_s28 }
 0xe3d   :  { %v698_v49 = vpop.permute.xlu0 %697 }
 0xe3e   :  { %v700_v50 = vadd.f32 %v698_v49, %v690_v48 }
 0xe40   :  { %2079 = vtanh.f32 %v700_v50 }
 0xe4a   :  { %v2080_v3 = vpop.eup %2079 }
 0xe4b   :  { %703 = vrot.lane.b32.xlu1 %v2080_v3, %s2151_s4 }
 0xebd   :  { %v704_v52 = vpop.permute.xlu1 %703 }
 0xebe   :  { %v706_v53 = vmul.f32 %v704_v52, %v688_v45  ;;  %v1763_v45 = vld [vmem:[%s2637_s8 + $0x8] sm:$0xff] }
 0xebf   :  { %v1055_v46 = vpack.c.bf16 %v1763_v45, %v1763_v45 }
 0xec0   :  { %v707_v54 = vpack.c.bf16 %v706_v53, %v706_v53 }
 0xec2   :  { %709 = vrot.lane.b32.xlu0 %v707_v54, %s2150_s28 }
 0xf34   :  { %v710_v55 = vpop.permute.xlu0 %709 }
 0xf35   :  { %712 = vst.msk [vmem:[#allocation2 + $0x10] sm:$0xf] %vm416_vm12, %v710_v55  ;;  %1925 = vmatmul.mubr.msk.bf16.vlgmr.msra.gmra.mrb[16].mxu0 %vm244_vm11, %v710_v55 }
 0xf36   :  { %1937 = vmatpush3.bf16.msra.mxu0 %v2287_v39  ;;  %1940 = vmatprep.mubr.msk.bf16.mxu0 %vm2149_vm10, %v2148_v15 }
 0xf37   :  { %1938 = vmatprep.subr.bf16.mxu0 %v2148_v15 }
 0xf3a   :  { %1939 = vmatpush3.bf16.msra.mxu0 %v2294_v40 }
 0xf3b   :  { %1956 = vmatprep.subr.bf16.mxu0 %v2148_v15 }
0x1008   :  { %v750_v56 = vpop.f32.mrb[16].mxu0 }
0x1009   :  { %v756_v57 = vadd.f32 %v750_v56, %v2337_v7  ;;  %v1926_v59 = vpop.f32.mrb[17].mxu0  ;;  %v2483_v56 = vld [vmem:[%s2641_s7] ss:$0 sm:$0xff] }
0x100a   :  { %v753_v60 = vpop.f32.mrb[18].mxu0 }
0x100b   :  { %2081 = vtanh.f32 %v756_v57  ;;  %v1927_v62 = vpop.f32.mrb[19].mxu0  ;;  %v757_v39 = vmul.f32 0.5, %v756_v57 }
0x100d   :  { %2083 = vtanh.f32 %v757_v39 }
0x1015   :  { %v2082_v63 = vpop.eup %2081 }
0x1016   :  { %764 = vrot.lane.b32.xlu1 %v2082_v63, %s2151_s4 }
0x1017   :  { %v2084_v0 = vpop.eup %2083 }
0x1018   :  { %v759_v2 = vadd.f32 1.0, %v2084_v0 }
0x101a   :  { %v760_v4 = vmul.f32 0.5, %v759_v2 }
0x101c   :  { %v762_v40 = vmul.f32 %v760_v4, %v700_v50 }
0x1088   :  { %v765_v6 = vpop.permute.xlu1 %764 }
0x1089   :  { %v767_v8 = vmul.f32 %v765_v6, %v760_v4 }
0x108b   :  { %769 = vrot.lane.b32.xlu0 %v767_v8, %s2150_s28 }
0x10fd   :  { %v770_v9 = vpop.permute.xlu0 %769 }
0x10fe   :  { %v772_v58 = vadd.f32 %v770_v9, %v762_v40 }
0x1100   :  { %2085 = vtanh.f32 %v772_v58 }
0x110a   :  { %v2086_v7 = vpop.eup %2085 }
0x110b   :  { %775 = vrot.lane.b32.xlu1 %v2086_v7, %s2151_s4 }
0x117d   :  { %v776_v10 = vpop.permute.xlu1 %775 }
0x117e   :  { %v778_v11 = vmul.f32 %v776_v10, %v760_v4 }
0x1180   :  { %v2409_v12 = vpack.c.bf16 %v778_v11, %v778_v11 }
0x1182   :  { %786 = vrot.lane.b32.xlu0 %v2409_v12, %s2150_s28 }
0x11f4   :  { %v787_v13 = vpop.permute.xlu0 %786 }
0x11f5   :  { %1933 = vmatmul.mubr.msk.bf16.vlgmr.msra.gmra.mrb[20].mxu1 %vm244_vm11, %v787_v13 }
0x11f6   :  { %1945 = vmatpush3.bf16.msra.mxu1 %v2045_v61 }
0x11f7   :  { %1946 = vmatprep.subr.bf16.mxu1 %v2046_v51 }
0x11fa   :  { %1947 = vmatpush3.bf16.msra.mxu1 %v2046_v51 }
0x11fb   :  { %1972 = vmatprep.subr.bf16.mxu1 %v2148_v15 }
0x12c8   :  { %v825_v14 = vpop.f32.mrb[20].mxu1 }
0x12c9   :  { %v831_v16 = vadd.f32 %v825_v14, %v2331_v1  ;;  %v1934_v17 = vpop.f32.mrb[21].mxu1 }
0x12ca   :  { %v828_v18 = vpop.f32.mrb[22].mxu1 }
0x12cb   :  { %2087 = vtanh.f32 %v831_v16  ;;  %v1935_v19 = vpop.f32.mrb[23].mxu1  ;;  %v832_v21 = vmul.f32 0.5, %v831_v16 }
0x12cd   :  { %2089 = vtanh.f32 %v832_v21 }
0x12d5   :  { %v2088_v20 = vpop.eup %2087 }
0x12d6   :  { %839 = vrot.lane.b32.xlu1 %v2088_v20, %s2151_s4 }
0x12d7   :  { %v2090_v22 = vpop.eup %2089 }
0x12d8   :  { %v834_v23 = vadd.f32 1.0, %v2090_v22 }
0x12da   :  { %v835_v24 = vmul.f32 0.5, %v834_v23 }
0x12dc   :  { %v837_v1 = vmul.f32 %v835_v24, %v772_v58 }
0x1348   :  { %v840_v25 = vpop.permute.xlu1 %839 }
0x1349   :  { %v842_v26 = vmul.f32 %v840_v25, %v835_v24 }
0x134b   :  { %844 = vrot.lane.b32.xlu0 %v842_v26, %s2150_s28 }
0x134f   :  { %487 = vrot.lane.b32.xlu0 %v486_v27, %s2150_s28 }
0x13bd   :  { %v845_v28 = vpop.permute.xlu0 %844 }
0x13be   :  { %v2419_v29 = vadd.f32 %v845_v28, %v837_v1  ;;  %v781_v28 = vrot.slane %v2409_v12, 4 }
0x13c0   :  { %2091 = vtanh.f32 %v2419_v29 }
0x13c1   :  { %v488_v30 = vpop.permute.xlu0 %487 }
0x13c2   :  { %491 = vst.msk [vmem:[#allocation2] sm:$0xf0] %vm490_vm13, %v488_v30 }
0x13c9   :  { %v943_v31 = vld [vmem:[#allocation2] sm:$0xff] }
0x13ca   :  { %v2092_v33 = vpop.eup %2091  ;;  %1948 = vmatprep.mubr.msk.bf16.mxu1 %vm244_vm11, %v943_v31 }
0x13cb   :  { %850 = vrot.lane.b32.xlu1 %v2092_v33, %s2151_s4 }
0x13cf   :  { %635 = vrot.lane.b32.xlu1 %v634_v34, %s2150_s28 }
0x143d   :  { %v851_v35 = vpop.permute.xlu1 %850 }
0x143e   :  { %v853_v36 = vmul.f32 %v851_v35, %v835_v24 }
0x1440   :  { %v854_v37 = vpack.c.bf16 %v853_v36, %v853_v36 }
0x1441   :  { %v636_v38 = vpop.permute.xlu1 %635 }
0x1442   :  { %638 = vst.msk [vmem:[#allocation2 + $0x8] sm:$0xf0] %vm490_vm13, %v636_v38  ;;  %856 = vrot.lane.b32.xlu0 %v854_v37, %s2150_s28 }
0x1446   :  { %1118 = vrot.lane.b32.xlu0 %v1764_v43, %s2150_s28 }
0x1449   :  { %v944_v41 = vld [vmem:[#allocation2 + $0x8] sm:$0xff] }
0x144a   :  { %1949 = vmatmul.mubr.msk.bf16.vlgmr.msra.gmra.mrb[24].mxu1 %vm244_vm11, %v944_v41 }
0x144b   :  { %1973 = vmatpush3.bf16.msra.mxu1 %v2439_v42 }
0x144c   :  { %1974 = vmatprep.subr.bf16.mxu1 %v2148_v15 }
0x144f   :  { %1975 = vmatpush3.bf16.msra.mxu1 %v2447_v32 }
0x1450   :  { %1988 = vmatprep.subr.bf16.mxu1 %v2148_v15 }
0x14b4   :  { %v857_v44 = vpop.permute.xlu0 %856 }
0x14b5   :  { %859 = vst.msk [vmem:[#allocation2 + $0x18] sm:$0xf] %vm416_vm12, %v857_v44  ;;  %1941 = vmatmul.mubr.msk.bf16.vlgmr.msra.gmra.mrb[20].mxu0 %vm244_vm11, %v857_v44 }
0x14b6   :  { %1957 = vmatpush3.bf16.msra.mxu0 %v2439_v42  ;;  %1960 = vmatprep.mubr.msk.bf16.mxu0 %vm2149_vm10, %v2148_v15 }
0x14b7   :  { %1958 = vmatprep.subr.bf16.mxu0 %v2148_v15 }
0x14b8   :  { %v1119_v9 = vpop.permute.xlu0 %1118 }
0x14ba   :  { %1959 = vmatpush3.bf16.msra.mxu0 %v2447_v32 }
0x14bb   :  { %1964 = vmatprep.subr.bf16.mxu0 %v2148_v15 }
0x14bd   :  { %1961 = vmatmul.mubr.msk.bf16.vlgmr.msra.gmra.mrb[24].mxu0 %vm244_vm11, %v1055_v46 }
0x14be   :  { %1965 = vmatpush3.bf16.msra.mxu0 %v2439_v42  ;;  %1968 = vmatprep.mubr.msk.bf16.mxu0 %vm2149_vm10, %v2148_v15 }
0x14bf   :  { %1966 = vmatprep.subr.bf16.mxu0 %v2148_v15 }
0x14c2   :  { %1967 = vmatpush3.bf16.msra.mxu0 %v2447_v32 }
0x14c3   :  { %1980 = vmatprep.subr.bf16.mxu0 %v2148_v15 }
0x151d   :  { %v2473_v47 = vpop.f32.mrb[24].mxu1 }
0x151e   :  { %v1016_v48 = vpop.f32.mrb[25].mxu1 }
0x151f   :  { %v2475_v49 = vpop.f32.mrb[26].mxu1  ;;  %v1017_v57 = vadd.f32 %v2483_v56, %v1016_v48 }
0x1520   :  { %v2477_v50 = vpop.f32.mrb[27].mxu1 }
0x1521   :  { %v1020_v51 = vadd.f32 %v2483_v56, %v2477_v50 }
0x1588   :  { %v897_v3 = vpop.f32.mrb[20].mxu0 }
0x1589   :  { %v903_v52 = vadd.f32 %v897_v3, %v2335_v5  ;;  %v1942_v53 = vpop.f32.mrb[21].mxu0 }
0x158a   :  { %v900_v54 = vpop.f32.mrb[22].mxu0 }
0x158b   :  { %v1943_v55 = vpop.f32.mrb[23].mxu0  ;;  %v904_v14 = vmul.f32 0.5, %v903_v52 }
0x1590   :  { %v1105_v59 = vpop.f32.mrb[24].mxu0 }
0x1591   :  { %v1111_v60 = vadd.f32 %v1105_v59, %v1017_v57  ;;  %v1962_v62 = vpop.f32.mrb[25].mxu0 }
0x1592   :  { %v1108_v63 = vpop.f32.mrb[26].mxu0 }
0x1593   :  { %2093 = vtanh.f32 %v1111_v60  ;;  %v1963_v39 = vpop.f32.mrb[27].mxu0  ;;  %v1112_v5 = vmul.f32 0.5, %v1111_v60 }
0x1595   :  { %2095 = vtanh.f32 %v1112_v5 }
0x159d   :  { %v2094_v0 = vpop.eup %2093 }
0x159e   :  { %1123 = vrot.lane.b32.xlu1 %v2094_v0, %s2151_s4 }
0x159f   :  { %v2096_v2 = vpop.eup %2095 }
0x15a0   :  { %v1114_v4 = vadd.f32 1.0, %v2096_v2 }
0x15a2   :  { %v1115_v6 = vmul.f32 0.5, %v1114_v4  ;;  %v1025_v4 = vadd.f32 %v2473_v47, %v2483_v56 }
0x15a4   :  { %v1121_v58 = vmul.f32 %v1119_v9, %v1115_v6 }
0x1610   :  { %v1124_v8 = vpop.permute.xlu1 %1123 }
0x1611   :  { %v1126_v40 = vmul.f32 %v1124_v8, %v1115_v6 }
0x1613   :  { %1128 = vrot.lane.b32.xlu1 %v1126_v40, %s2150_s28 }
0x1685   :  { %v1129_v7 = vpop.permute.xlu1 %1128 }
0x1686   :  { %v1131_v10 = vadd.f32 %v1129_v7, %v1121_v58 }
0x1688   :  { %2097 = vtanh.f32 %v1131_v10 }
0x1689   :  { %2099 = vtanh.f32 %v903_v52 }
0x168a   :  { %2101 = vtanh.f32 %v904_v14 }
0x1692   :  { %v2098_v11 = vpop.eup %2097 }
0x1693   :  { %1134 = vrot.lane.b32.xlu0 %v2098_v11, %s2151_s4  ;;  %v2100_v13 = vpop.eup %2099 }
0x1694   :  { %v2102_v16 = vpop.eup %2101 }
0x1695   :  { %v906_v17 = vadd.f32 1.0, %v2102_v16 }
0x1697   :  { %911 = vrot.lane.b32.xlu0 %v2100_v13, %s2151_s4  ;;  %v907_v21 = vmul.f32 0.5, %v906_v17 }
0x1699   :  { %v909_v25 = vmul.f32 %v907_v21, %v2419_v29 }
0x1705   :  { %v1135_v18 = vpop.permute.xlu0 %1134 }
0x1706   :  { %v1137_v19 = vmul.f32 %v1135_v18, %v1115_v6 }
0x1708   :  { %v1138_v20 = vpack.c.bf16 %v1137_v19, %v1137_v19 }
0x1709   :  { %v912_v22 = vpop.permute.xlu0 %911 }
0x170a   :  { %v914_v23 = vmul.f32 %v912_v22, %v907_v21  ;;  %1140 = vrot.lane.b32.xlu1 %v1138_v20, %s2150_s28 }
0x170c   :  { %916 = vrot.lane.b32.xlu0 %v914_v23, %s2150_s28 }
0x177c   :  { %v1141_v24 = vpop.permute.xlu1 %1140 }
0x177d   :  { %1969 = vmatmul.mubr.msk.bf16.vlgmr.msra.gmra.mrb[28].mxu0 %vm244_vm11, %v1141_v24 }
0x177e   :  { %v917_v26 = vpop.permute.xlu0 %916  ;;  %1981 = vmatpush3.bf16.msra.mxu0 %v2439_v42  ;;  %1984 = vmatprep.mubr.msk.bf16.mxu0 %vm2149_vm10, %v2148_v15 }
0x177f   :  { %v2497_v27 = vadd.f32 %v917_v26, %v909_v25  ;;  %1982 = vmatprep.subr.bf16.mxu0 %v2148_v15  ;;  %v1028_v25 = vadd.f32 %v2475_v49, %v2483_v56 }
0x1781   :  { %2103 = vtanh.f32 %v2497_v27 }
0x1782   :  { %1983 = vmatpush3.bf16.msra.mxu0 %v2447_v32 }
0x1783   :  { %1996 = vmatprep.subr.bf16.mxu0 %v2148_v15 }
0x178b   :  { %v2104_v1 = vpop.eup %2103 }
0x178c   :  { %922 = vrot.lane.b32.xlu0 %v2104_v1, %s2151_s4 }
0x1790   :  { %782 = vrot.lane.b32.xlu0 %v781_v28, %s2150_s28 }
0x17fe   :  { %v923_v29 = vpop.permute.xlu0 %922 }
0x17ff   :  { %v2512_v3 = vmul.f32 %v923_v29, %v907_v21 }
0x1801   :  { %v926_v52 = vpack.c.bf16 %v2512_v3, %v2512_v3 }
0x1802   :  { %v783_v61 = vpop.permute.xlu0 %782 }
0x1803   :  { %785 = vst.msk [vmem:[#allocation2 + $0x10] sm:$0xf0] %vm490_vm13, %v783_v61  ;;  %v928_v54 = vrot.slane %v926_v52, 4 }
0x180a   :  { %v945_v30 = vld [vmem:[#allocation2 + $0x10] sm:$0xff] }
0x180b   :  { %1952 = vmatprep.mubr.msk.bf16.mxu1 %vm244_vm11, %v945_v30 }
0x1850   :  { %v1179_v31 = vpop.f32.mrb[28].mxu0 }
0x1851   :  { %v1185_v33 = vadd.f32 %v1179_v31, %v1020_v51  ;;  %v1970_v34 = vpop.f32.mrb[29].mxu0 }
0x1852   :  { %v1182_v35 = vpop.f32.mrb[30].mxu0 }
0x1853   :  { %2105 = vtanh.f32 %v1185_v33  ;;  %v1971_v36 = vpop.f32.mrb[31].mxu0  ;;  %v1186_v12 = vmul.f32 0.5, %v1185_v33 }
0x1855   :  { %2107 = vtanh.f32 %v1186_v12 }
0x185d   :  { %v2106_v37 = vpop.eup %2105 }
0x185e   :  { %1193 = vrot.lane.b32.xlu1 %v2106_v37, %s2151_s4 }
0x185f   :  { %v2108_v38 = vpop.eup %2107 }
0x1860   :  { %v1188_v41 = vadd.f32 1.0, %v2108_v38 }
0x1862   :  { %v1189_v43 = vmul.f32 0.5, %v1188_v41 }
0x1864   :  { %v1191_v46 = vmul.f32 %v1189_v43, %v1131_v10 }
0x18d0   :  { %v1194_v44 = vpop.permute.xlu1 %1193 }
0x18d1   :  { %v1196_v45 = vmul.f32 %v1194_v44, %v1189_v43 }
0x18d3   :  { %1198 = vrot.lane.b32.xlu1 %v1196_v45, %s2150_s28 }
0x1945   :  { %v1199_v48 = vpop.permute.xlu1 %1198 }
0x1946   :  { %v1201_v50 = vadd.f32 %v1199_v48, %v1191_v46 }
0x1948   :  { %2109 = vtanh.f32 %v1201_v50 }
0x1952   :  { %v2110_v53 = vpop.eup %2109 }
0x1953   :  { %1204 = vrot.lane.b32.xlu1 %v2110_v53, %s2151_s4 }
0x1957   :  { %929 = vrot.lane.b32.xlu1 %v928_v54, %s2150_s28 }
0x19c5   :  { %v1205_v55 = vpop.permute.xlu1 %1204 }
0x19c6   :  { %v1207_v57 = vmul.f32 %v1205_v55, %v1189_v43 }
0x19c8   :  { %v1208_v59 = vpack.c.bf16 %v1207_v57, %v1207_v57 }
0x19c9   :  { %v930_v60 = vpop.permute.xlu1 %929 }
0x19ca   :  { %932 = vst.msk [vmem:[#allocation2 + $0x18] sm:$0xf0] %vm490_vm13, %v930_v60  ;;  %1210 = vrot.lane.b32.xlu0 %v1208_v59, %s2150_s28 }
0x19d1   :  { %v946_v62 = vld [vmem:[#allocation2 + $0x18] sm:$0xff] }
0x19d2   :  { %1953 = vmatmul.mubr.msk.bf16.gmra.mrb[28].mxu1 %vm244_vm11, %v946_v62 }
0x19d3   :  { %1976 = vmatprep.mubr.msk.bf16.mxu1 %vm2149_vm10, %v2148_v15 }
0x1a3c   :  { %v1211_v63 = vpop.permute.xlu0 %1210 }
0x1a3d   :  { %1977 = vmatmul.mubr.msk.bf16.vlgmr.msra.gmra.mrb[32].mxu1 %vm244_vm11, %v1211_v63 }
0x1a3e   :  { %1989 = vmatpush3.bf16.msra.mxu1 %v2439_v42  ;;  %1992 = vmatprep.mubr.msk.bf16.mxu1 %vm2149_vm10, %v2148_v15 }
0x1a3f   :  { %1990 = vmatprep.subr.bf16.mxu1 %v2148_v15 }
0x1a42   :  { %1991 = vmatpush3.bf16.msra.mxu1 %v2447_v32 }
0x1a43   :  { %2004 = vmatprep.subr.bf16.mxu1 %v2148_v15 }
0x1aa5   :  { %v2530_v39 = vpop.f32.mrb[28].mxu1 }
0x1aa6   :  { %v2532_v0 = vpop.f32.mrb[29].mxu1 }
0x1aa7   :  { %v2534_v5 = vpop.f32.mrb[30].mxu1  ;;  %v1033_v46 = vadd.f32 %v2483_v56, %v2532_v0 }
0x1aa8   :  { %v2536_v2 = vpop.f32.mrb[31].mxu1 }
0x1b10   :  { %v1249_v6 = vpop.f32.mrb[32].mxu1 }
0x1b11   :  { %v1255_v8 = vadd.f32 %v1249_v6, %v1025_v4  ;;  %v1978_v40 = vpop.f32.mrb[33].mxu1 }
0x1b12   :  { %v1252_v9 = vpop.f32.mrb[34].mxu1 }
0x1b13   :  { %2111 = vtanh.f32 %v1255_v8  ;;  %v1979_v58 = vpop.f32.mrb[35].mxu1  ;;  %v1256_v10 = vmul.f32 0.5, %v1255_v8 }
0x1b15   :  { %2113 = vtanh.f32 %v1256_v10 }
0x1b1d   :  { %v2112_v7 = vpop.eup %2111 }
0x1b1e   :  { %1263 = vrot.lane.b32.xlu1 %v2112_v7, %s2151_s4 }
0x1b1f   :  { %v2114_v11 = vpop.eup %2113 }
0x1b20   :  { %v1258_v13 = vadd.f32 1.0, %v2114_v11  ;;  %v1036_v11 = vadd.f32 %v2483_v56, %v2536_v2 }
0x1b22   :  { %v1259_v14 = vmul.f32 0.5, %v1258_v13 }
0x1b24   :  { %v1261_v18 = vmul.f32 %v1259_v14, %v1201_v50 }
0x1b90   :  { %v1264_v16 = vpop.permute.xlu1 %1263 }
0x1b91   :  { %v1266_v17 = vmul.f32 %v1264_v16, %v1259_v14 }
0x1b93   :  { %1268 = vrot.lane.b32.xlu0 %v1266_v17, %s2150_s28 }
0x1c05   :  { %v1269_v47 = vpop.permute.xlu0 %1268 }
0x1c06   :  { %v1271_v19 = vadd.f32 %v1269_v47, %v1261_v18 }
0x1c08   :  { %2115 = vtanh.f32 %v1271_v19 }
0x1c12   :  { %v2116_v20 = vpop.eup %2115 }
0x1c13   :  { %1274 = vrot.lane.b32.xlu1 %v2116_v20, %s2151_s4 }
0x1c85   :  { %v1275_v21 = vpop.permute.xlu1 %1274 }
0x1c86   :  { %v1277_v22 = vmul.f32 %v1275_v21, %v1259_v14 }
0x1c88   :  { %v1278_v23 = vpack.c.bf16 %v1277_v22, %v1277_v22 }
0x1c8a   :  { %1280 = vrot.lane.b32.xlu0 %v1278_v23, %s2150_s28 }
0x1cfc   :  { %v1281_v24 = vpop.permute.xlu0 %1280 }
0x1cfd   :  { %1985 = vmatmul.mubr.msk.bf16.vlgmr.msra.gmra.mrb[32].mxu0 %vm244_vm11, %v1281_v24 }
0x1cfe   :  { %1997 = vmatpush3.bf16.msra.mxu0 %v2439_v42  ;;  %2000 = vmatprep.mubr.msk.bf16.mxu0 %vm2149_vm10, %v2148_v15 }
0x1cff   :  { %1998 = vmatprep.subr.bf16.mxu0 %v2148_v15 }
0x1d02   :  { %1999 = vmatpush3.bf16.msra.mxu0 %v2447_v32 }
0x1d03   :  { %2012 = vmatprep.subr.bf16.mxu0 %v2148_v15 }
0x1dd0   :  { %v1319_v26 = vpop.f32.mrb[32].mxu0 }
0x1dd1   :  { %v1325_v1 = vadd.f32 %v1319_v26, %v1028_v25  ;;  %v1986_v28 = vpop.f32.mrb[33].mxu0 }
0x1dd2   :  { %v1322_v29 = vpop.f32.mrb[34].mxu0 }
0x1dd3   :  { %2117 = vtanh.f32 %v1325_v1  ;;  %v1987_v61 = vpop.f32.mrb[35].mxu0  ;;  %v1326_v51 = vmul.f32 0.5, %v1325_v1 }
0x1dd4   :  { %v1041_v61 = vadd.f32 %v2530_v39, %v2483_v56 }
0x1dd5   :  { %2119 = vtanh.f32 %v1326_v51 }
0x1ddd   :  { %v2118_v30 = vpop.eup %2117 }
0x1dde   :  { %1333 = vrot.lane.b32.xlu1 %v2118_v30, %s2151_s4 }
0x1ddf   :  { %v2120_v31 = vpop.eup %2119 }
0x1de0   :  { %v1328_v33 = vadd.f32 1.0, %v2120_v31 }
0x1de2   :  { %v1329_v34 = vmul.f32 0.5, %v1328_v33 }
0x1de4   :  { %v1331_v37 = vmul.f32 %v1329_v34, %v1271_v19 }
0x1e50   :  { %v1334_v35 = vpop.permute.xlu1 %1333 }
0x1e51   :  { %v1336_v36 = vmul.f32 %v1334_v35, %v1329_v34 }
0x1e53   :  { %1338 = vrot.lane.b32.xlu0 %v1336_v36, %s2150_s28 }
0x1ec5   :  { %v1339_v49 = vpop.permute.xlu0 %1338 }
0x1ec6   :  { %v1341_v12 = vadd.f32 %v1339_v49, %v1331_v37 }
0x1ec8   :  { %2121 = vtanh.f32 %v1341_v12 }
0x1ed2   :  { %v2122_v38 = vpop.eup %2121 }
0x1ed3   :  { %1344 = vrot.lane.b32.xlu1 %v2122_v38, %s2151_s4 }
0x1f45   :  { %v1345_v41 = vpop.permute.xlu1 %1344 }
0x1f46   :  { %v1347_v43 = vmul.f32 %v1345_v41, %v1329_v34 }
0x1f48   :  { %v1348_v44 = vpack.c.bf16 %v1347_v43, %v1347_v43 }
0x1f4a   :  { %1350 = vrot.lane.b32.xlu0 %v1348_v44, %s2150_s28 }
0x1fbc   :  { %v1351_v45 = vpop.permute.xlu0 %1350 }
0x1fbd   :  { %1993 = vmatmul.mubr.msk.bf16.vlgmr.msra.gmra.mrb[36].mxu1 %vm244_vm11, %v1351_v45 }
0x1fbe   :  { %2005 = vmatpush3.bf16.msra.mxu1 %v2439_v42  ;;  %2008 = vmatprep.mubr.msk.bf16.mxu1 %vm2149_vm10, %v2148_v15 }
0x1fbf   :  { %2006 = vmatprep.subr.bf16.mxu1 %v2148_v15 }
0x1fc2   :  { %2007 = vmatpush3.bf16.msra.mxu1 %v2447_v32 }
0x1fc3   :  { %2020 = vmatprep.subr.bf16.mxu1 %v2148_v15 }
0x2090   :  { %v1389_v48 = vpop.f32.mrb[36].mxu1 }
0x2091   :  { %v1395_v50 = vadd.f32 %v1389_v48, %v1033_v46  ;;  %v1994_v52 = vpop.f32.mrb[37].mxu1 }
0x2092   :  { %v1392_v53 = vpop.f32.mrb[38].mxu1 }
0x2093   :  { %2123 = vtanh.f32 %v1395_v50  ;;  %v1995_v54 = vpop.f32.mrb[39].mxu1  ;;  %v1396_v57 = vmul.f32 0.5, %v1395_v50  ;;  %v1044_v53 = vadd.f32 %v2534_v5, %v2483_v56 }
0x2095   :  { %2125 = vtanh.f32 %v1396_v57 }
0x209d   :  { %v2124_v55 = vpop.eup %2123 }
0x209e   :  { %1403 = vrot.lane.b32.xlu1 %v2124_v55, %s2151_s4 }
0x209f   :  { %v2126_v59 = vpop.eup %2125 }
0x20a0   :  { %v1398_v60 = vadd.f32 1.0, %v2126_v59 }
0x20a2   :  { %v1399_v62 = vmul.f32 0.5, %v1398_v60 }
0x20a4   :  { %v1401_v6 = vmul.f32 %v1399_v62, %v1341_v12 }
0x2110   :  { %v1404_v63 = vpop.permute.xlu1 %1403 }
0x2111   :  { %v1406_v4 = vmul.f32 %v1404_v63, %v1399_v62 }
0x2113   :  { %1408 = vrot.lane.b32.xlu0 %v1406_v4, %s2150_s28 }
0x2185   :  { %v1409_v0 = vpop.permute.xlu0 %1408 }
0x2186   :  { %v1411_v8 = vadd.f32 %v1409_v0, %v1401_v6 }
0x2188   :  { %2127 = vtanh.f32 %v1411_v8 }
0x2192   :  { %v2128_v40 = vpop.eup %2127 }
0x2193   :  { %1414 = vrot.lane.b32.xlu1 %v2128_v40, %s2151_s4 }
0x2205   :  { %v1415_v9 = vpop.permute.xlu1 %1414 }
0x2206   :  { %v1417_v58 = vmul.f32 %v1415_v9, %v1399_v62 }
0x2208   :  { %v1418_v7 = vpack.c.bf16 %v1417_v58, %v1417_v58 }
0x220a   :  { %1420 = vrot.lane.b32.xlu0 %v1418_v7, %s2150_s28  ;;  %v2049_v7 = vld [vmem:[%s2642_s10] sm:$0xff]  }
0x227c   :  { %v1421_v10 = vpop.permute.xlu0 %1420 }
0x227d   :  { %2001 = vmatmul.mubr.msk.bf16.vlgmr.msra.gmra.mrb[36].mxu0 %vm244_vm11, %v1421_v10  ;;  %v2050_v10 = vld [vmem:[%s2642_s10 + $0x8] sm:$0xff]   ;;  %s2152_s10 = smov 96  }
0x227e   :  { %2013 = vmatpush3.bf16.msra.mxu0 %v2439_v42  ;;  %2016 = vmatprep.mubr.msk.bf16.mxu0 %vm2149_vm10, %v2148_v15 }
0x227f   :  { %2014 = vmatprep.subr.bf16.mxu0 %v2148_v15 }
0x2282   :  { %2015 = vmatpush3.bf16.msra.mxu0 %v2447_v32 }
0x2350   :  { %v1459_v13 = vpop.f32.mrb[36].mxu0 }
0x2351   :  { %v1465_v14 = vadd.f32 %v1459_v13, %v1036_v11  ;;  %v2002_v16 = vpop.f32.mrb[37].mxu0 }
0x2352   :  { %v1462_v17 = vpop.f32.mrb[38].mxu0 }
0x2353   :  { %2129 = vtanh.f32 %v1465_v14  ;;  %v2003_v18 = vpop.f32.mrb[39].mxu0  ;;  %v1466_v42 = vmul.f32 0.5, %v1465_v14 }
0x2355   :  { %2131 = vtanh.f32 %v1466_v42 }
0x235d   :  { %v2130_v47 = vpop.eup %2129 }
0x235e   :  { %1473 = vrot.lane.b32.xlu1 %v2130_v47, %s2151_s4 }
0x235f   :  { %v2132_v19 = vpop.eup %2131 }
0x2360   :  { %v1468_v20 = vadd.f32 1.0, %v2132_v19 }
0x2362   :  { %v1469_v21 = vmul.f32 0.5, %v1468_v20 }
0x2364   :  { %v1471_v32 = vmul.f32 %v1469_v21, %v1411_v8 }
0x23d0   :  { %v1474_v22 = vpop.permute.xlu1 %1473 }
0x23d1   :  { %v1476_v23 = vmul.f32 %v1474_v22, %v1469_v21 }
0x23d3   :  { %1478 = vrot.lane.b32.xlu0 %v1476_v23, %s2150_s28 }
0x2445   :  { %v1479_v2 = vpop.permute.xlu0 %1478 }
0x2446   :  { %v1481_v24 = vadd.f32 %v1479_v2, %v1471_v32 }
0x2448   :  { %2133 = vtanh.f32 %v1481_v24 }
0x2452   :  { %v2134_v25 = vpop.eup %2133 }
0x2453   :  { %1484 = vrot.lane.b32.xlu1 %v2134_v25, %s2151_s4 }
0x24c5   :  { %v1485_v26 = vpop.permute.xlu1 %1484 }
0x24c6   :  { %v1487_v1 = vmul.f32 %v1485_v26, %v1469_v21 }
0x24c8   :  { %v1488_v28 = vpack.c.bf16 %v1487_v1, %v1487_v1 }
0x24ca   :  { %1490 = vrot.lane.b32.xlu0 %v1488_v28, %s2150_s28 }
0x253c   :  { %v1491_v29 = vpop.permute.xlu0 %1490 }
0x253d   :  { %2009 = vmatmul.mubr.msk.bf16.vlgmr.msra.gmra.mrb[40].mxu1 %vm244_vm11, %v1491_v29 }
0x253e   :  { %2024 = vmatprep.mubr.msk.bf16.mxu1 %vm2149_vm10, %v2148_v15  ;;  %2021 = vmatpush3.bf16.msra.mxu1 %v2049_v7 }
0x253f   :  { %2022 = vmatprep.subr.bf16.mxu1 %v2148_v15 }
0x2542   :  { %2023 = vmatpush3.bf16.msra.mxu1 %v2050_v10 }
0x2610   :  { %v1529_v30 = vpop.f32.mrb[40].mxu1 }
0x2611   :  { %v1535_v51 = vadd.f32 %v1529_v30, %v1041_v61  ;;  %v2010_v31 = vpop.f32.mrb[41].mxu1 }
0x2612   :  { %v1532_v33 = vpop.f32.mrb[42].mxu1 }
0x2613   :  { %2135 = vtanh.f32 %v1535_v51  ;;  %v2011_v34 = vpop.f32.mrb[43].mxu1  ;;  %v1536_v36 = vmul.f32 0.5, %v1535_v51 }
0x2615   :  { %2137 = vtanh.f32 %v1536_v36 }
0x261d   :  { %v2136_v35 = vpop.eup %2135 }
0x261e   :  { %1543 = vrot.lane.b32.xlu1 %v2136_v35, %s2151_s4 }
0x261f   :  { %v2138_v37 = vpop.eup %2137 }
0x2620   :  { %v1538_v49 = vadd.f32 1.0, %v2138_v37 }
0x2622   :  { %v1539_v12 = vmul.f32 0.5, %v1538_v49 }
0x2624   :  { %v1541_v43 = vmul.f32 %v1539_v12, %v1481_v24 }
0x2690   :  { %v1544_v38 = vpop.permute.xlu1 %1543 }
0x2691   :  { %v1546_v41 = vmul.f32 %v1544_v38, %v1539_v12 }
0x2693   :  { %1548 = vrot.lane.b32.xlu0 %v1546_v41, %s2150_s28 }
0x2705   :  { %v1549_v39 = vpop.permute.xlu0 %1548 }
0x2706   :  { %v1551_v44 = vadd.f32 %v1549_v39, %v1541_v43 }
0x2708   :  { %2139 = vtanh.f32 %v1551_v44 }
0x2712   :  { %v2140_v45 = vpop.eup %2139 }
0x2713   :  { %1554 = vrot.lane.b32.xlu1 %v2140_v45, %s2151_s4 }
0x2785   :  { %v1555_v46 = vpop.permute.xlu1 %1554 }
0x2786   :  { %v1557_v48 = vmul.f32 %v1555_v46, %v1539_v12 }
0x2788   :  { %v1558_v50 = vpack.c.bf16 %v1557_v48, %v1557_v48 }
0x278a   :  { %1560 = vrot.lane.b32.xlu0 %v1558_v50, %s2150_s28 }
0x27fc   :  { %v1561_v52 = vpop.permute.xlu0 %1560 }
0x27fd   :  { %2017 = vmatmul.mubr.msk.bf16.vlgmr.msra.gmra.mrb[40].mxu0 %vm244_vm11, %v1561_v52 }
0x28d0   :  { %v1599_v54 = vpop.f32.mrb[40].mxu0 }
0x28d1   :  { %v1605_v55 = vadd.f32 %v1599_v54, %v1044_v53  ;;  %v2018_v57 = vpop.f32.mrb[41].mxu0 }
0x28d2   :  { %v1602_v59 = vpop.f32.mrb[42].mxu0 }
0x28d3   :  { %2141 = vtanh.f32 %v1605_v55  ;;  %v2019_v60 = vpop.f32.mrb[43].mxu0  ;;  %v1606_v63 = vmul.f32 0.5, %v1605_v55 }
0x28d5   :  { %2143 = vtanh.f32 %v1606_v63 }
0x28dd   :  { %v2142_v62 = vpop.eup %2141 }
0x28de   :  { %1613 = vrot.lane.b32.xlu1 %v2142_v62, %s2151_s4 }
0x28df   :  { %v2144_v4 = vpop.eup %2143 }
0x28e0   :  { %v1608_v6 = vadd.f32 1.0, %v2144_v4 }
0x28e2   :  { %v1609_v0 = vmul.f32 0.5, %v1608_v6 }
0x28e4   :  { %v1611_v9 = vmul.f32 %v1609_v0, %v1551_v44 }
0x2950   :  { %v1614_v8 = vpop.permute.xlu1 %1613 }
0x2951   :  { %v1616_v40 = vmul.f32 %v1614_v8, %v1609_v0 }
0x2953   :  { %1618 = vrot.lane.b32.xlu0 %v1616_v40, %s2150_s28 }
0x29c5   :  { %v1619_v56 = vpop.permute.xlu0 %1618 }
0x29c6   :  { %v1621_v5 = vadd.f32 %v1619_v56, %v1611_v9 }
0x29c8   :  { %2145 = vtanh.f32 %v1621_v5 }
0x29d2   :  { %v2146_v58 = vpop.eup %2145 }
0x29d3   :  { %1624 = vrot.lane.b32.xlu1 %v2146_v58, %s2151_s4 }
0x29d7   :  { %934 = vrot.lane.b32.xlu1 %v2512_v3, %s2150_s28 }
0x2a45   :  { %v1625_v11 = vpop.permute.xlu1 %1624 }
0x2a46   :  { %v1627_v13 = vmul.f32 %v1625_v11, %v1609_v0 }
0x2a48   :  { %v1640_v14 = vpack.c.bf16 %v1627_v13, %v1627_v13  ;;  %1629 = vrot.lane.b32.xlu1 %v1627_v13, %s2150_s28 }
0x2a49   :  { %v935_v16 = vpop.permute.xlu1 %934 }
0x2a4a   :  { %937 = vst.msk [vmem:[%s2643_s13] sm:$0xff] %vm244_vm11, %v935_v16  ;;  %1653 = vrot.lane.b32.xlu0 %v1640_v14, %s2150_s28 }
0x2a4e   :  { %939 = vrot.lane.b32.xlu0 %v2497_v27, %s2152_s10  ;;  %v1777_v27 = vld [vmem:[%s2645_s11] ss:$0 sm:$0xff] }
0x2a52   :  { %1635 = vrot.lane.b32.xlu0 %v1621_v5, %s2152_s10 }
0x2aba   :  { %v1630_v15 = vpop.permute.xlu1 %1629 }
0x2abb   :  { %1775 = vst.msk [vmem:[%s2643_s13 + $0x8] sm:$0xff] %vm244_vm11, %v1630_v15 }
0x2abc   :  { %v1654_v3 = vpop.permute.xlu0 %1653 }
0x2abd   :  { %2025 = vmatmul.mubr.msk.bf16.vlgmr.msra.gmra.mrb[44].mxu1 %vm244_vm11, %v1654_v3 }
0x2ac0   :  { %v940_v17 = vpop.permute.xlu0 %939 }
0x2ac1   :  { %942 = vst.msk [vmem:[%s2644_s14] sm:$0xff] %vm244_vm11, %v940_v17 }
0x2ac4   :  { %v1636_v18 = vpop.permute.xlu0 %1635 }
0x2ac5   :  { %1776 = vst.msk [vmem:[%s2644_s14 + $0x8] sm:$0xff] %vm244_vm11, %v1636_v18 }
0x2b90   :  { %v1704_v47 = vpop.f32.mrb[44].mxu1 }
0x2b91   :  { %v1705_v42 = vadd.f32 %v1777_v27, %v1704_v47  ;;  %v2026_v19 = vpop.f32.mrb[45].mxu1 }
0x2b92   :  { %v1707_v20 = vpop.f32.mrb[46].mxu1 }
0x2b93   :  { %1710 = vst [vmem:[%s2646_s12] sm:$0xff] %v1705_v42  ;;  %v2027_v21 = vpop.f32.mrb[47].mxu1 }

</bundles_post_ra>
